<compile_context>
chip_gen: v7x
topology: tpu7x:2x2x1
jax: 0.10.0
libtpu: 0.0.40
codegen_flags: <defaults>
</compile_context>

<pallas_src>
import math
import jax
import jax.numpy as jnp
from jax.experimental import pallas as pl
from jax.experimental.pallas import tpu as pltpu

HIDDEN = 512
LR_MUL = 0.01
NEG_SLOPE = 0.2                                  # fused_leaky_relu negative slope
FL_SCALE = math.sqrt(2.0)                        # fused_leaky_relu output scale
EQ_SCALE = (1.0 / math.sqrt(HIDDEN)) * LR_MUL    # EqualLinear weight scale (in_dim=512 everywhere)


def mapper_kernel(x_ref,
                  w0_ref, b0_ref,
                  w1_ref, b1_ref,
                  w2_ref, b2_ref,
                  w3_ref, b3_ref,
                  o_ref):
    x = x_ref[...].astype(jnp.float32)

    # --- PixelNorm fused with the first EqualLinear input scale ---
    # x * rsqrt(mean(x^2) + 1e-8) * EQ_SCALE   (EQ_SCALE folded into the (B,1) rsqrt)
    inv = jax.lax.rsqrt(jnp.mean(x * x, axis=-1, keepdims=True) + 1e-8) * EQ_SCALE
    h = x * inv

    # --- 3x EqualLinear(512, 512) + fused leaky-relu ---
    # next layer's EQ_SCALE is folded into the leaky-relu output scale so the
    # only per-layer vector work on (B,512) is: bf16 cast, bias add, max, 1 mul.
    hidden_scale = FL_SCALE * EQ_SCALE
    for w_ref, b_ref in ((w0_ref, b0_ref), (w1_ref, b1_ref), (w2_ref, b2_ref)):
        pre = jnp.dot(h.astype(jnp.bfloat16), w_ref[...],
                      preferred_element_type=jnp.float32) + b_ref[...]
        h = jnp.maximum(pre, NEG_SLOPE * pre) * hidden_scale

    # --- Final EqualLinear(512, out_pad) + fused leaky-relu ---
    pre = jnp.dot(h.astype(jnp.bfloat16), w3_ref[...],
                  preferred_element_type=jnp.float32) + b3_ref[...]
    o_ref[...] = (jnp.maximum(pre, NEG_SLOPE * pre) * FL_SCALE).astype(o_ref.dtype)


def init_params(key, n_dim, n_ctx):
    """Deterministic init matching the PyTorch module's shapes.

    EqualLinear stores weight (out_dim, in_dim) = randn/lr_mul, bias = zeros.
    We pre-transpose to (in_dim, out_dim), store weights in bf16 (MXU-native),
    and pre-fold lr_mul into the stored bias (glue-level only).
    """
    out_last = n_dim * n_ctx
    dims = [(HIDDEN, HIDDEN)] * 3 + [(HIDDEN, out_last)]
    keys = jax.random.split(key, len(dims))
    params = {}
    for i, ((din, dout), k) in enumerate(zip(dims, keys)):
        w_pt = jax.random.normal(k, (dout, din), jnp.float32) / LR_MUL   # PyTorch (out,in)
        params[f"w{i}"] = jnp.transpose(w_pt).astype(jnp.bfloat16)       # (in,out), bf16
        params[f"b{i}"] = jnp.zeros((1, dout), jnp.float32) * LR_MUL     # bias*lr_mul pre-folded
    return params


def _pick_tile_b(B):
    # Tile the batch only when it is big enough to benefit from pipelining /
    # megacore split; otherwise process the whole batch in one block.
    if B > 256:
        for t in (256, 128, 64, 32, 16, 8):
            if B % t == 0:
                return t
    return B


def single_mapper(x, params):
    B, D = x.shape
    out_dim = params["w3"].shape[1]                      # n_dim * n_ctx (unpadded)
    out_pad = ((out_dim + 127) // 128) * 128             # lane-dense output width

    w3, b3 = params["w3"], params["b3"]
    if out_pad != out_dim:                               # pad final layer to 128-lane width
        w3 = jnp.pad(w3, ((0, 0), (0, out_pad - out_dim)))
        b3 = jnp.pad(b3, ((0, 0), (0, out_pad - out_dim)))

    tile_b = _pick_tile_b(B)
    grid = (B // tile_b,)

    inputs = [x,
              params["w0"], params["b0"],
              params["w1"], params["b1"],
              params["w2"], params["b2"],
              w3, b3]

    # x / out are tiled along the batch; weights & biases are full-array blocks
    # with a constant (0,0) block index, so they are DMA'd once and stay resident.
    resident = pl.BlockSpec  # alias for readability
    in_specs = [pl.BlockSpec((tile_b, D), lambda i: (i, 0))] + \
               [resident(a.shape, lambda i: (0, 0)) for a in inputs[1:]]
    out_spec = pl.BlockSpec((tile_b, out_pad), lambda i: (i, 0))

    out = pl.pallas_call(
        mapper_kernel,
        out_shape=jax.ShapeDtypeStruct((B, out_pad), x.dtype),
        grid_spec=pltpu.PrefetchScalarGridSpec(
            num_scalar_prefetch=0,
            grid=grid,
            in_specs=in_specs,
            out_specs=out_spec,
        ),
        compiler_params=pltpu.CompilerParams(
            dimension_semantics=("parallel",)),
    )(*inputs)

    return out[:, :out_dim] if out_pad != out_dim else out


def single_mapper_ref(x, params):
    """Pure-JAX reference mirroring the PyTorch forward (same bf16 weights)."""
    x = x.astype(jnp.float32)
    x = x * jax.lax.rsqrt(jnp.mean(x * x, axis=-1, keepdims=True) + 1e-8)
    h = x
    for i in range(4):
        w = params[f"w{i}"].astype(jnp.float32)
        pre = (h * EQ_SCALE) @ w + params[f"b{i}"]       # bias already has lr_mul folded
        h = jnp.where(pre >= 0.0, pre, NEG_SLOPE * pre) * FL_SCALE
    return h


if __name__ == "__main__":
    key = jax.random.PRNGKey(0)
    kx, kp = jax.random.split(key)

    # Small shapes: batch=8, n_dim=16, n_ctx=4 (hidden width 512 fixed by the module).
    B, N_DIM, N_CTX = 8, 16, 4
    x = jax.random.normal(kx, (B, HIDDEN), jnp.float32)
    params = init_params(kp, N_DIM, N_CTX)

    out = single_mapper(x, params)
    out = jax.block_until_ready(out)

    ref = single_mapper_ref(x, params)
    assert out.shape == (B, N_DIM * N_CTX)
    # bf16 weights / bf16 activation inputs to the MXU (f32 accumulation) vs f32 ref.
    assert jnp.allclose(out, ref, rtol=2e-2, atol=2e-2), float(jnp.max(jnp.abs(out - ref)))

    print("KERNEL_OK")
</pallas_src>

<mosaic_0001>
module attributes {stable_mosaic.version = 11 : i64} {
  func.func @mapper_kernel(%arg0: i32, %arg1: memref<8x512xf32, #tpu.memory_space<vmem>>, %arg2: memref<512x512xbf16, #tpu.memory_space<vmem>>, %arg3: memref<1x512xf32, #tpu.memory_space<vmem>>, %arg4: memref<512x512xbf16, #tpu.memory_space<vmem>>, %arg5: memref<1x512xf32, #tpu.memory_space<vmem>>, %arg6: memref<512x512xbf16, #tpu.memory_space<vmem>>, %arg7: memref<1x512xf32, #tpu.memory_space<vmem>>, %arg8: memref<512x128xbf16, #tpu.memory_space<vmem>>, %arg9: memref<1x128xf32, #tpu.memory_space<vmem>>, %arg10: memref<8x128xf32, #tpu.memory_space<vmem>>) attributes {dimension_semantics = [#tpu.dimension_semantics<parallel>], iteration_bounds = array<i64: 1>, scalar_prefetch = 0 : i64, scratch_operands = 0 : i64, tpu.core_type = #tpu.core_type<tc>, window_params = [{transform_indices = @transform_0, window_bounds = array<i64: 8, 512>}, {pipeline_mode = #tpu.pipeline_mode<synchronous>, transform_indices = @transform_1, window_bounds = array<i64: 512, 512>}, {pipeline_mode = #tpu.pipeline_mode<synchronous>, transform_indices = @transform_2, window_bounds = array<i64: 1, 512>}, {pipeline_mode = #tpu.pipeline_mode<synchronous>, transform_indices = @transform_3, window_bounds = array<i64: 512, 512>}, {pipeline_mode = #tpu.pipeline_mode<synchronous>, transform_indices = @transform_4, window_bounds = array<i64: 1, 512>}, {pipeline_mode = #tpu.pipeline_mode<synchronous>, transform_indices = @transform_5, window_bounds = array<i64: 512, 512>}, {pipeline_mode = #tpu.pipeline_mode<synchronous>, transform_indices = @transform_6, window_bounds = array<i64: 1, 512>}, {pipeline_mode = #tpu.pipeline_mode<synchronous>, transform_indices = @transform_7, window_bounds = array<i64: 512, 128>}, {pipeline_mode = #tpu.pipeline_mode<synchronous>, transform_indices = @transform_8, window_bounds = array<i64: 1, 128>}, {transform_indices = @transform_9, window_bounds = array<i64: 8, 128>}]} {
    %c0 = arith.constant 0 : index
    %c0_0 = arith.constant 0 : index
    %0 = vector.load %arg1[%c0, %c0_0] : memref<8x512xf32, #tpu.memory_space<vmem>>, vector<8x512xf32>
    %1 = arith.mulf %0, %0 : vector<8x512xf32>
    %cst = arith.constant dense<0.000000e+00> : vector<8xf32>
    %2 = vector.multi_reduction <add>, %1, %cst [1] : vector<8x512xf32> to vector<8xf32>
    %3 = vector.shape_cast %2 : vector<8xf32> to vector<8x1xf32>
    %cst_1 = arith.constant 5.120000e+02 : f32
    %4 = vector.broadcast %cst_1 : f32 to vector<8x1xf32>
    %5 = arith.divf %3, %4 : vector<8x1xf32>
    %cst_2 = arith.constant 9.99999993E-9 : f32
    %6 = vector.broadcast %cst_2 : f32 to vector<8x1xf32>
    %7 = arith.addf %5, %6 : vector<8x1xf32>
    %8 = math.rsqrt %7 : vector<8x1xf32>
    %cst_3 = arith.constant 4.41941724E-4 : f32
    %9 = vector.broadcast %cst_3 : f32 to vector<8x1xf32>
    %10 = arith.mulf %8, %9 : vector<8x1xf32>
    %11 = vector.broadcast %10 : vector<8x1xf32> to vector<8x512xf32>
    %12 = arith.mulf %0, %11 : vector<8x512xf32>
    %13 = arith.truncf %12 : vector<8x512xf32> to vector<8x512xbf16>
    %c0_4 = arith.constant 0 : index
    %c0_5 = arith.constant 0 : index
    %14 = vector.load %arg2[%c0_4, %c0_5] : memref<512x512xbf16, #tpu.memory_space<vmem>>, vector<512x512xbf16>
    %cst_6 = arith.constant dense<0.000000e+00> : vector<8x512xf32>
    %15 = tpu.matmul %13, %14, %cst_6 {dimension_numbers = #tpu.dot_dimension_numbers<[1], [0], [0], [1], [0, 0, 1, 1], [], []>} : vector<8x512xbf16>, vector<512x512xbf16>, vector<8x512xf32> -> vector<8x512xf32>
    %c0_7 = arith.constant 0 : index
    %c0_8 = arith.constant 0 : index
    %16 = vector.load %arg3[%c0_7, %c0_8] : memref<1x512xf32, #tpu.memory_space<vmem>>, vector<1x512xf32>
    %17 = vector.broadcast %16 : vector<1x512xf32> to vector<8x512xf32>
    %18 = arith.addf %15, %17 : vector<8x512xf32>
    %cst_9 = arith.constant 2.000000e-01 : f32
    %19 = vector.broadcast %cst_9 : f32 to vector<8x512xf32>
    %20 = arith.mulf %19, %18 : vector<8x512xf32>
    %21 = arith.maximumf %18, %20 : vector<8x512xf32>
    %cst_10 = arith.constant 6.250000e-04 : f32
    %22 = vector.broadcast %cst_10 : f32 to vector<8x512xf32>
    %23 = arith.mulf %21, %22 : vector<8x512xf32>
    %24 = arith.truncf %23 : vector<8x512xf32> to vector<8x512xbf16>
    %c0_11 = arith.constant 0 : index
    %c0_12 = arith.constant 0 : index
    %25 = vector.load %arg4[%c0_11, %c0_12] : memref<512x512xbf16, #tpu.memory_space<vmem>>, vector<512x512xbf16>
    %cst_13 = arith.constant dense<0.000000e+00> : vector<8x512xf32>
    %26 = tpu.matmul %24, %25, %cst_13 {dimension_numbers = #tpu.dot_dimension_numbers<[1], [0], [0], [1], [0, 0, 1, 1], [], []>} : vector<8x512xbf16>, vector<512x512xbf16>, vector<8x512xf32> -> vector<8x512xf32>
    %c0_14 = arith.constant 0 : index
    %c0_15 = arith.constant 0 : index
    %27 = vector.load %arg5[%c0_14, %c0_15] : memref<1x512xf32, #tpu.memory_space<vmem>>, vector<1x512xf32>
    %28 = vector.broadcast %27 : vector<1x512xf32> to vector<8x512xf32>
    %29 = arith.addf %26, %28 : vector<8x512xf32>
    %cst_16 = arith.constant 2.000000e-01 : f32
    %30 = vector.broadcast %cst_16 : f32 to vector<8x512xf32>
    %31 = arith.mulf %30, %29 : vector<8x512xf32>
    %32 = arith.maximumf %29, %31 : vector<8x512xf32>
    %cst_17 = arith.constant 6.250000e-04 : f32
    %33 = vector.broadcast %cst_17 : f32 to vector<8x512xf32>
    %34 = arith.mulf %32, %33 : vector<8x512xf32>
    %35 = arith.truncf %34 : vector<8x512xf32> to vector<8x512xbf16>
    %c0_18 = arith.constant 0 : index
    %c0_19 = arith.constant 0 : index
    %36 = vector.load %arg6[%c0_18, %c0_19] : memref<512x512xbf16, #tpu.memory_space<vmem>>, vector<512x512xbf16>
    %cst_20 = arith.constant dense<0.000000e+00> : vector<8x512xf32>
    %37 = tpu.matmul %35, %36, %cst_20 {dimension_numbers = #tpu.dot_dimension_numbers<[1], [0], [0], [1], [0, 0, 1, 1], [], []>} : vector<8x512xbf16>, vector<512x512xbf16>, vector<8x512xf32> -> vector<8x512xf32>
    %c0_21 = arith.constant 0 : index
    %c0_22 = arith.constant 0 : index
    %38 = vector.load %arg7[%c0_21, %c0_22] : memref<1x512xf32, #tpu.memory_space<vmem>>, vector<1x512xf32>
    %39 = vector.broadcast %38 : vector<1x512xf32> to vector<8x512xf32>
    %40 = arith.addf %37, %39 : vector<8x512xf32>
    %cst_23 = arith.constant 2.000000e-01 : f32
    %41 = vector.broadcast %cst_23 : f32 to vector<8x512xf32>
    %42 = arith.mulf %41, %40 : vector<8x512xf32>
    %43 = arith.maximumf %40, %42 : vector<8x512xf32>
    %cst_24 = arith.constant 6.250000e-04 : f32
    %44 = vector.broadcast %cst_24 : f32 to vector<8x512xf32>
    %45 = arith.mulf %43, %44 : vector<8x512xf32>
    %46 = arith.truncf %45 : vector<8x512xf32> to vector<8x512xbf16>
    %c0_25 = arith.constant 0 : index
    %c0_26 = arith.constant 0 : index
    %47 = vector.load %arg8[%c0_25, %c0_26] : memref<512x128xbf16, #tpu.memory_space<vmem>>, vector<512x128xbf16>
    %cst_27 = arith.constant dense<0.000000e+00> : vector<8x128xf32>
    %48 = tpu.matmul %46, %47, %cst_27 {dimension_numbers = #tpu.dot_dimension_numbers<[1], [0], [0], [1], [0, 0, 1, 1], [], []>} : vector<8x512xbf16>, vector<512x128xbf16>, vector<8x128xf32> -> vector<8x128xf32>
    %c0_28 = arith.constant 0 : index
    %c0_29 = arith.constant 0 : index
    %49 = vector.load %arg9[%c0_28, %c0_29] : memref<1x128xf32, #tpu.memory_space<vmem>>, vector<1x128xf32>
    %50 = vector.broadcast %49 : vector<1x128xf32> to vector<8x128xf32>
    %51 = arith.addf %48, %50 : vector<8x128xf32>
    %cst_30 = arith.constant 2.000000e-01 : f32
    %52 = vector.broadcast %cst_30 : f32 to vector<8x128xf32>
    %53 = arith.mulf %52, %51 : vector<8x128xf32>
    %54 = arith.maximumf %51, %53 : vector<8x128xf32>
    %cst_31 = arith.constant 1.41421354 : f32
    %55 = vector.broadcast %cst_31 : f32 to vector<8x128xf32>
    %56 = arith.mulf %54, %55 : vector<8x128xf32>
    %c0_32 = arith.constant 0 : index
    %c0_33 = arith.constant 0 : index
    %57 = vector.load %arg10[%c0_32, %c0_33] : memref<8x128xf32, #tpu.memory_space<vmem>>, vector<8x128xf32>
    tpu.vector_store %arg10[%c0_32, %c0_33], %56 {strides = array<i32>} : memref<8x128xf32, #tpu.memory_space<vmem>>, vector<8x128xf32>,
    return
  }
  func.func @transform_0(%arg0: i32) -> (i32, i32) {
    %c0_i32 = arith.constant 0 : i32
    %c0_i32_0 = arith.constant 0 : i32
    return %arg0, %c0_i32 : i32, i32
  }
  func.func @transform_1(%arg0: i32) -> (i32, i32) {
    %c0_i32 = arith.constant 0 : i32
    %c0_i32_0 = arith.constant 0 : i32
    %c0_i32_1 = arith.constant 0 : i32
    return %c0_i32, %c0_i32_0 : i32, i32
  }
  func.func @transform_2(%arg0: i32) -> (i32, i32) {
    %c0_i32 = arith.constant 0 : i32
    %c0_i32_0 = arith.constant 0 : i32
    %c0_i32_1 = arith.constant 0 : i32
    return %c0_i32, %c0_i32_0 : i32, i32
  }
  func.func @transform_3(%arg0: i32) -> (i32, i32) {
    %c0_i32 = arith.constant 0 : i32
    %c0_i32_0 = arith.constant 0 : i32
    %c0_i32_1 = arith.constant 0 : i32
    return %c0_i32, %c0_i32_0 : i32, i32
  }
  func.func @transform_4(%arg0: i32) -> (i32, i32) {
    %c0_i32 = arith.constant 0 : i32
    %c0_i32_0 = arith.constant 0 : i32
    %c0_i32_1 = arith.constant 0 : i32
    return %c0_i32, %c0_i32_0 : i32, i32
  }
  func.func @transform_5(%arg0: i32) -> (i32, i32) {
    %c0_i32 = arith.constant 0 : i32
    %c0_i32_0 = arith.constant 0 : i32
    %c0_i32_1 = arith.constant 0 : i32
    return %c0_i32, %c0_i32_0 : i32, i32
  }
  func.func @transform_6(%arg0: i32) -> (i32, i32) {
    %c0_i32 = arith.constant 0 : i32
    %c0_i32_0 = arith.constant 0 : i32
    %c0_i32_1 = arith.constant 0 : i32
    return %c0_i32, %c0_i32_0 : i32, i32
  }
  func.func @transform_7(%arg0: i32) -> (i32, i32) {
    %c0_i32 = arith.constant 0 : i32
    %c0_i32_0 = arith.constant 0 : i32
    %c0_i32_1 = arith.constant 0 : i32
    return %c0_i32, %c0_i32_0 : i32, i32
  }
  func.func @transform_8(%arg0: i32) -> (i32, i32) {
    %c0_i32 = arith.constant 0 : i32
    %c0_i32_0 = arith.constant 0 : i32
    %c0_i32_1 = arith.constant 0 : i32
    return %c0_i32, %c0_i32_0 : i32, i32
  }
  func.func @transform_9(%arg0: i32) -> (i32, i32) {
    %c0_i32 = arith.constant 0 : i32
    %c0_i32_0 = arith.constant 0 : i32
    return %arg0, %c0_i32 : i32, i32
  }
}

</mosaic_0001>

<bundles_post_ra>
// kernel: tpu_custom_call.1
= control target key start
LH: loop header
LB: loop body
LE: loop exit
PB: predicated region body
PF: predicated region fallthrough
CT: control target
= control target key end

     0   :  { %14 = vsyncpa [#allocation3], 0  ;;  %s4876_s0 = inlined_call_operand.hbm [shape: f32[8,512], index: 0, kind: input, shape index: {}]   ;;  %s4877_s1 = inlined_call_operand.hbm [shape: bf16[512,512], index: 1, kind: input, shape index: {}]   ;;  %s4878_s2 = inlined_call_operand.vmem [shape: f32[1,512], index: 2, kind: input, shape index: {}]   ;;  %s4879_s3 = inlined_call_operand.hbm [shape: bf16[512,512], index: 3, kind: input, shape index: {}]   ;;  %s4880_s4 = inlined_call_operand.vmem [shape: f32[1,512], index: 4, kind: input, shape index: {}]   ;;  %s4881_s5 = inlined_call_operand.hbm [shape: bf16[512,512], index: 5, kind: input, shape index: {}]   ;;  %s4882_s6 = inlined_call_operand.vmem [shape: f32[1,512], index: 6, kind: input, shape index: {}]   ;;  %s4883_s7 = inlined_call_operand.hbm [shape: bf16[512,128], index: 7, kind: input, shape index: {}]   ;;  %s4884_s8 = inlined_call_operand.vmem [shape: f32[1,128], index: 8, kind: input, shape index: {}]   ;;  %s4885_s9 = inlined_call_operand.hbm [shape: f32[8,128], index: 9, kind: output, shape index: {}]  }
   0x1   :  { %15 = vsyncpa [#allocation6], 0 }
   0x2   :  { %16 = vsyncpa [#allocation9], 0 }
   0x3   :  { %17 = vsyncpa [#allocation4], 0  ;;  %s4658_s30 = smov [#allocation5]   ;;  %s4518_s13 = scalar_lea.hbm %s4877_s1, 16384 }
   0x4   :  { %s33_s10 = sshll.u32 %s4658_s30, 4  ;;  %p4519_p0 = scmp.ne.s32.totalorder %s4877_s1, %s4518_s13  ;;  %s34_s10 = int_to_ptr.vmem [resolvable:$true] %s33_s10 }
   0x5   :  { %p4522_p1 = scmp.lt.u32.totalorder %s4518_s13, %s4877_s1 }
   0x7   :  { %p4524_p2 = pnand %p4522_p1, %p4519_p0 }
   0x9   :  { %4527 = shalt.err (!%p4524_p2)
}
   0xa   :  { %s4528_s18 = scalar_lea.vmem %s34_s10, 16384  ;;  %p4533_p4 = scmp.lt.s32.totalorder %s34_s10, %s34_s10 }
   0xb   :  { %p4529_p3 = scmp.ne.s32.totalorder %s34_s10, %s4528_s18  ;;  %p4534_p5 = scmp.lt.s32.totalorder %s4528_s18, %s4528_s18 }
   0xd   :  { %p4535_p6 = por %p4534_p5, %p4533_p4 }
   0xf   :  { %p4536_p7 = pnand %p4535_p6, %p4529_p3 }
  0x11   :  { %4539 = shalt.err (!%p4536_p7)
}
  0x12   :  { %s4659_s19 = smov 256   ;;  %s4660_s20 = smov 16  }
  0x13   :  { %39 = dma.hbm_to_vmem [thread:$0]  %s4877_s1, 16384, %s34_s10, [#allocation6], %s4659_s19, %s4659_s19, %s4660_s20  }
  0x14   :  { %s4661_s23 = smov [#allocation8]   ;;  %s4662_s25 = smov [#allocation2]  }
  0x15   :  { %s61_s24 = sshll.u32 %s4661_s23, 4  ;;  %s24_s26 = sshll.u32 %s4662_s25, 4  ;;  %s62_s24 = int_to_ptr.vmem [resolvable:$true] %s61_s24  ;;  %s25_s26 = int_to_ptr.vmem [resolvable:$true] %s24_s26 }
  0x16   :  { %s4540_s29 = scalar_lea.hbm %s4881_s5, 16384 }
  0x17   :  { %p4541_p8 = scmp.ne.s32.totalorder %s4881_s5, %s4540_s29  ;;  %p4544_p9 = scmp.lt.u32.totalorder %s4540_s29, %s4881_s5 }
  0x19   :  { %p4546_p10 = pnand %p4544_p9, %p4541_p8 }
  0x1b   :  { %4549 = shalt.err (!%p4546_p10)
}
  0x1c   :  { %s4550_s1 = scalar_lea.vmem %s62_s24, 16384  ;;  %p4555_p12 = scmp.lt.s32.totalorder %s62_s24, %s62_s24 }
  0x1d   :  { %p4551_p11 = scmp.ne.s32.totalorder %s62_s24, %s4550_s1  ;;  %p4556_p13 = scmp.lt.s32.totalorder %s4550_s1, %s4550_s1 }
  0x1f   :  { %p4557_p0 = por %p4556_p13, %p4555_p12 }
  0x21   :  { %p4558_p1 = pnand %p4557_p0, %p4551_p11 }
  0x23   :  { %4561 = shalt.err (!%p4558_p1)
}
  0x24   :  { %67 = dma.hbm_to_vmem [thread:$0]  %s4881_s5, 16384, %s62_s24, [#allocation9], %s4659_s19, %s4659_s19, %s4660_s20  }
  0x25   :  { %s4562_s17 = scalar_lea.hbm %s4876_s0, 512 }
  0x26   :  { %p4563_p2 = scmp.ne.s32.totalorder %s4876_s0, %s4562_s17  ;;  %p4566_p3 = scmp.lt.u32.totalorder %s4562_s17, %s4876_s0 }
  0x28   :  { %p4568_p4 = pnand %p4566_p3, %p4563_p2 }
  0x2a   :  { %4571 = shalt.err (!%p4568_p4)
}
  0x2b   :  { %s4572_s25 = scalar_lea.vmem %s25_s26, 512  ;;  %p4577_p6 = scmp.lt.s32.totalorder %s25_s26, %s25_s26 }
  0x2c   :  { %p4573_p5 = scmp.ne.s32.totalorder %s25_s26, %s4572_s25  ;;  %p4578_p7 = scmp.lt.s32.totalorder %s4572_s25, %s4572_s25 }
  0x2e   :  { %p4579_p8 = por %p4578_p7, %p4577_p6 }
  0x30   :  { %p4580_p9 = pnand %p4579_p8, %p4573_p5 }
  0x32   :  { %4583 = shalt.err (!%p4580_p9)
}
  0x33   :  { %27 = dma.hbm_to_vmem [thread:$0]  %s4876_s0, 512, %s25_s26, [#allocation3]  }
  0x34   :  { %s4663_s27 = smov [#allocation7]   ;;  %s4664_s29 = smov [#allocation10]  }
  0x35   :  { %s47_s28 = sshll.u32 %s4663_s27, 4  ;;  %s75_s30 = sshll.u32 %s4664_s29, 4  ;;  %s48_s28 = int_to_ptr.vmem [resolvable:$true] %s47_s28  ;;  %s76_s30 = int_to_ptr.vmem [resolvable:$true] %s75_s30 }
  0x36   :  { %s4584_s13 = scalar_lea.hbm %s4879_s3, 16384 }
  0x37   :  { %p4585_p10 = scmp.ne.s32.totalorder %s4879_s3, %s4584_s13  ;;  %p4588_p11 = scmp.lt.u32.totalorder %s4584_s13, %s4879_s3 }
  0x39   :  { %p4590_p12 = pnand %p4588_p11, %p4585_p10 }
  0x3b   :  { %4593 = shalt.err (!%p4590_p12)
}
  0x3c   :  { %s4594_s0 = scalar_lea.vmem %s48_s28, 16384  ;;  %p4599_p0 = scmp.lt.s32.totalorder %s48_s28, %s48_s28 }
  0x3d   :  { %p4595_p13 = scmp.ne.s32.totalorder %s48_s28, %s4594_s0  ;;  %p4600_p1 = scmp.lt.s32.totalorder %s4594_s0, %s4594_s0 }
  0x3f   :  { %p4601_p2 = por %p4600_p1, %p4599_p0 }
  0x41   :  { %p4602_p3 = pnand %p4601_p2, %p4595_p13 }
  0x43   :  { %4605 = shalt.err (!%p4602_p3)
}
  0x44   :  { %53 = dma.hbm_to_vmem [thread:$0]  %s4879_s3, 16384, %s48_s28, [#allocation6], %s4659_s19, %s4659_s19, %s4660_s20  }
  0x45   :  { %s4606_s21 = scalar_lea.hbm %s4883_s7, 4096 }
  0x46   :  { %p4607_p4 = scmp.ne.s32.totalorder %s4883_s7, %s4606_s21  ;;  %p4610_p5 = scmp.lt.u32.totalorder %s4606_s21, %s4883_s7 }
  0x48   :  { %p4612_p6 = pnand %p4610_p5, %p4607_p4 }
  0x4a   :  { %4615 = shalt.err (!%p4612_p6)
}
  0x4b   :  { %s4616_s24 = scalar_lea.vmem %s76_s30, 4096  ;;  %p4621_p8 = scmp.lt.s32.totalorder %s76_s30, %s76_s30 }
  0x4c   :  { %p4617_p7 = scmp.ne.s32.totalorder %s76_s30, %s4616_s24  ;;  %p4622_p9 = scmp.lt.s32.totalorder %s4616_s24, %s4616_s24 }
  0x4e   :  { %p4623_p10 = por %p4622_p9, %p4621_p8 }
  0x50   :  { %p4624_p11 = pnand %p4623_p10, %p4617_p7 }
  0x52   :  { %4627 = shalt.err (!%p4624_p11)
}
  0x53   :  { %s4665_s3 = smov 64   ;;  %s4666_s19 = smov 4  }
  0x54   :  { %81 = dma.hbm_to_vmem [thread:$0]  %s4883_s7, 4096, %s76_s30, [#allocation9], %s4665_s3, %s4665_s3, %s4666_s19  }
  0x55   :  { %4650 = dma.done.wait [#allocation3], 512  }
  0x56   :  { %4651 = vsyncadd [#allocation3], 4294966784 }
  0x57   :  { %4652 = dma.done.wait [#allocation6], 32768  }
  0x58   :  { %4653 = vsyncadd [#allocation6], 4294934528 }
  0x59   :  { %4654 = dma.done.wait [#allocation9], 20480  }
  0x5a   :  { %4655 = vsyncadd [#allocation9], 4294946816  ;;  %v4787_v0 = vld [vmem:[#allocation2] sm:$0xff]  ;;  %v4789_v1 = vld [vmem:[#allocation2 + $0x8] sm:$0xff]  ;;  %s4667_s12 = smov [#allocation11]  }
  0x5b   :  { %v102_v2 = vld [vmem:[#allocation2 + $0x10] sm:$0xff]  ;;  %v4791_v3 = vld [vmem:[#allocation2 + $0x18] sm:$0xff]  ;;  %v104_v4 = vmul.f32 %v4787_v0, %v4787_v0  ;;  %v105_v5 = vmul.f32 %v4789_v1, %v4789_v1  ;;  %s3389_s13 = sshll.u32 %s4667_s12, 4  ;;  %s3390_s13 = int_to_ptr.vmem [resolvable:$true] %s3389_s13 }
  0x5c   :  { %v106_v6 = vmul.f32 %v102_v2, %v102_v2  ;;  %v3907_v7 = vld [vmem:[#allocation5 + $0x4] ss:$16 sps:$4 sm:$0xff]   ;;  %v107_v8 = vmul.f32 %v4791_v3, %v4791_v3  ;;  %v3909_v10 = vld [vmem:[#allocation5 + $0xc] ss:$16 sps:$4 sm:$0xff]   ;;  %v3911_v11 = vld [vmem:[#allocation5] ss:$16 sps:$4 sm:$0xff]   ;;  %p4633_p13 = scmp.lt.s32.totalorder %s3390_s13, %s3390_s13 }
  0x5d   :  { %v108_v9 = vadd.f32 %v105_v5, %v104_v4  ;;  %v3912_v12 = vld [vmem:[#allocation5 + $0x8] ss:$16 sps:$4 sm:$0xff]   ;;  %916 = vmatprep.subr.bf16.mxu0 %v3907_v7  ;;  %v3913_v13 = vld [vmem:[#allocation5 + $0x24] ss:$16 sps:$4 sm:$0xff]   ;;  %998 = vmatprep.subr.bf16.mxu1 %v3909_v10  ;;  %v3915_v15 = vld [vmem:[#allocation5 + $0x2c] ss:$16 sps:$4 sm:$0xff]  }
  0x5e   :  { %917 = vmatpush1.bf16.msra.mxu0 %v3911_v11  ;;  %999 = vmatpush1.bf16.msra.mxu1 %v3912_v12  ;;  %v3917_v16 = vld [vmem:[#allocation5 + $0x20] ss:$16 sps:$4 sm:$0xff]   ;;  %v3918_v17 = vld [vmem:[#allocation5 + $0x28] ss:$16 sps:$4 sm:$0xff]   ;;  %v3919_v19 = vld [vmem:[#allocation5 + $0x44] ss:$16 sps:$4 sm:$0xff]  }
  0x5f   :  { %v109_v14 = vadd.f32 %v108_v9, %v106_v6  ;;  %918 = vmatprep.subr.bf16.mxu0 %v3913_v13  ;;  %1000 = vmatprep.subr.bf16.mxu1 %v3915_v15  ;;  %v3921_v20 = vld [vmem:[#allocation5 + $0x4c] ss:$16 sps:$4 sm:$0xff]   ;;  %v3923_v21 = vld [vmem:[#allocation5 + $0x40] ss:$16 sps:$4 sm:$0xff]   ;;  %v3924_v22 = vld [vmem:[#allocation5 + $0x48] ss:$16 sps:$4 sm:$0xff]  }
  0x60   :  { %v3925_v23 = vld [vmem:[#allocation5 + $0x64] ss:$16 sps:$4 sm:$0xff]   ;;  %v3927_v24 = vld [vmem:[#allocation5 + $0x6c] ss:$16 sps:$4 sm:$0xff]   ;;  %v3929_v25 = vld [vmem:[#allocation5 + $0x60] ss:$16 sps:$4 sm:$0xff]  }
  0x61   :  { %v110_v18 = vadd.f32 %v109_v14, %v107_v8  ;;  %v3930_v26 = vld [vmem:[#allocation5 + $0x68] ss:$16 sps:$4 sm:$0xff]   ;;  %v3931_v27 = vld [vmem:[#allocation5 + $0x84] ss:$16 sps:$4 sm:$0xff]   ;;  %v3933_v28 = vld [vmem:[#allocation5 + $0x8c] ss:$16 sps:$4 sm:$0xff]  }
  0x62   :  { %919 = vmatpush1.bf16.msra.mxu0 %v3917_v16  ;;  %1001 = vmatpush1.bf16.msra.mxu1 %v3918_v17  ;;  %v3935_v29 = vld [vmem:[#allocation5 + $0x80] ss:$16 sps:$4 sm:$0xff]   ;;  %v3936_v30 = vld [vmem:[#allocation5 + $0x88] ss:$16 sps:$4 sm:$0xff]   ;;  %v3937_v31 = vld [vmem:[#allocation5 + $0xa4] ss:$16 sps:$4 sm:$0xff]  }
  0x63   :  { %111 = vadd.xlane.f32.xlu0 %v110_v18  ;;  %920 = vmatprep.subr.bf16.mxu0 %v3919_v19  ;;  %v3939_v32 = vld [vmem:[#allocation5 + $0xac] ss:$16 sps:$4 sm:$0xff]   ;;  %v3941_v33 = vld [vmem:[#allocation5 + $0xa0] ss:$16 sps:$4 sm:$0xff]   ;;  %v3942_v34 = vld [vmem:[#allocation5 + $0xa8] ss:$16 sps:$4 sm:$0xff]  }
  0x64   :  { %1002 = vmatprep.subr.bf16.mxu1 %v3921_v20  ;;  %v3943_v35 = vld [vmem:[#allocation5 + $0xc4] ss:$16 sps:$4 sm:$0xff]   ;;  %v3945_v36 = vld [vmem:[#allocation5 + $0xcc] ss:$16 sps:$4 sm:$0xff]   ;;  %v3947_v37 = vld [vmem:[#allocation5 + $0xc0] ss:$16 sps:$4 sm:$0xff]  }
  0x65   :  { %v3948_v38 = vld [vmem:[#allocation5 + $0xc8] ss:$16 sps:$4 sm:$0xff]   ;;  %v3949_v39 = vld [vmem:[#allocation5 + $0xe4] ss:$16 sps:$4 sm:$0xff]   ;;  %v3951_v40 = vld [vmem:[#allocation5 + $0xec] ss:$16 sps:$4 sm:$0xff]  }
  0x66   :  { %921 = vmatpush1.bf16.msra.mxu0 %v3923_v21  ;;  %1003 = vmatpush1.bf16.msra.mxu1 %v3924_v22  ;;  %v3953_v41 = vld [vmem:[#allocation5 + $0xe0] ss:$16 sps:$4 sm:$0xff]   ;;  %v3954_v42 = vld [vmem:[#allocation5 + $0xe8] ss:$16 sps:$4 sm:$0xff]   ;;  %v3955_v43 = vld [vmem:[#allocation5 + $0x104] ss:$16 sps:$4 sm:$0xff]  }
  0x67   :  { %922 = vmatprep.subr.bf16.mxu0 %v3925_v23  ;;  %1004 = vmatprep.subr.bf16.mxu1 %v3927_v24  ;;  %v3957_v44 = vld [vmem:[#allocation5 + $0x10c] ss:$16 sps:$4 sm:$0xff]   ;;  %v3959_v45 = vld [vmem:[#allocation5 + $0x100] ss:$16 sps:$4 sm:$0xff]   ;;  %v3960_v46 = vld [vmem:[#allocation5 + $0x108] ss:$16 sps:$4 sm:$0xff]  }
  0x68   :  { %v3961_v47 = vld [vmem:[#allocation5 + $0x124] ss:$16 sps:$4 sm:$0xff]   ;;  %v3963_v48 = vld [vmem:[#allocation5 + $0x12c] ss:$16 sps:$4 sm:$0xff]   ;;  %v3965_v49 = vld [vmem:[#allocation5 + $0x120] ss:$16 sps:$4 sm:$0xff]  }
  0x69   :  { %v3966_v50 = vld [vmem:[#allocation5 + $0x128] ss:$16 sps:$4 sm:$0xff]   ;;  %v3967_v51 = vld [vmem:[#allocation5 + $0x144] ss:$16 sps:$4 sm:$0xff]   ;;  %v3969_v52 = vld [vmem:[#allocation5 + $0x14c] ss:$16 sps:$4 sm:$0xff]  }
  0x6a   :  { %923 = vmatpush1.bf16.msra.mxu0 %v3929_v25  ;;  %1005 = vmatpush1.bf16.msra.mxu1 %v3930_v26  ;;  %v3971_v53 = vld [vmem:[#allocation5 + $0x140] ss:$16 sps:$4 sm:$0xff]   ;;  %v3972_v54 = vld [vmem:[#allocation5 + $0x148] ss:$16 sps:$4 sm:$0xff]   ;;  %v3973_v55 = vld [vmem:[#allocation5 + $0x164] ss:$16 sps:$4 sm:$0xff]  }
  0x6b   :  { %924 = vmatprep.subr.bf16.mxu0 %v3931_v27  ;;  %1006 = vmatprep.subr.bf16.mxu1 %v3933_v28  ;;  %v3975_v56 = vld [vmem:[#allocation5 + $0x16c] ss:$16 sps:$4 sm:$0xff]   ;;  %v3977_v57 = vld [vmem:[#allocation5 + $0x160] ss:$16 sps:$4 sm:$0xff]   ;;  %v3978_v58 = vld [vmem:[#allocation5 + $0x168] ss:$16 sps:$4 sm:$0xff]  }
  0x6c   :  { %v3979_v59 = vld [vmem:[#allocation5 + $0x184] ss:$16 sps:$4 sm:$0xff]   ;;  %v3981_v60 = vld [vmem:[#allocation5 + $0x18c] ss:$16 sps:$4 sm:$0xff]   ;;  %v3983_v61 = vld [vmem:[#allocation5 + $0x180] ss:$16 sps:$4 sm:$0xff]  }
  0x6d   :  { %v3984_v62 = vld [vmem:[#allocation5 + $0x188] ss:$16 sps:$4 sm:$0xff]   ;;  %v3985_v63 = vld [vmem:[#allocation5 + $0x1a4] ss:$16 sps:$4 sm:$0xff]   ;;  %v3987_v2 = vld [vmem:[#allocation5 + $0x1ac] ss:$16 sps:$4 sm:$0xff]  }
  0x6e   :  { %925 = vmatpush1.bf16.msra.mxu0 %v3935_v29  ;;  %1007 = vmatpush1.bf16.msra.mxu1 %v3936_v30  ;;  %v3989_v4 = vld [vmem:[#allocation5 + $0x1a0] ss:$16 sps:$4 sm:$0xff]   ;;  %v3990_v5 = vld [vmem:[#allocation5 + $0x1a8] ss:$16 sps:$4 sm:$0xff]   ;;  %v3991_v6 = vld [vmem:[#allocation5 + $0x1c4] ss:$16 sps:$4 sm:$0xff]  }
  0x6f   :  { %926 = vmatprep.subr.bf16.mxu0 %v3937_v31  ;;  %1008 = vmatprep.subr.bf16.mxu1 %v3939_v32  ;;  %v3993_v7 = vld [vmem:[#allocation5 + $0x1cc] ss:$16 sps:$4 sm:$0xff]   ;;  %v3995_v8 = vld [vmem:[#allocation5 + $0x1c0] ss:$16 sps:$4 sm:$0xff]   ;;  %v3996_v9 = vld [vmem:[#allocation5 + $0x1c8] ss:$16 sps:$4 sm:$0xff]  }
  0x70   :  { %v3997_v10 = vld [vmem:[#allocation5 + $0x1e4] ss:$16 sps:$4 sm:$0xff]   ;;  %v3999_v11 = vld [vmem:[#allocation5 + $0x1ec] ss:$16 sps:$4 sm:$0xff]   ;;  %v4001_v12 = vld [vmem:[#allocation5 + $0x1e0] ss:$16 sps:$4 sm:$0xff]  }
  0x71   :  { %v4002_v13 = vld [vmem:[#allocation5 + $0x1e8] ss:$16 sps:$4 sm:$0xff]   ;;  %v4005_v14 = vld [vmem:[#allocation5 + $0x204] ss:$16 sps:$4 sm:$0xff]   ;;  %v4008_v15 = vld [vmem:[#allocation5 + $0x20c] ss:$16 sps:$4 sm:$0xff]  }
  0x72   :  { %927 = vmatpush1.bf16.msra.mxu0 %v3941_v33  ;;  %1009 = vmatpush1.bf16.msra.mxu1 %v3942_v34  ;;  %v4003_v22 = vld [vmem:[#allocation5 + $0x200] ss:$16 sps:$4 sm:$0xff]   ;;  %v4006_v23 = vld [vmem:[#allocation5 + $0x208] ss:$16 sps:$4 sm:$0xff]   ;;  %v4011_v28 = vld [vmem:[#allocation5 + $0x224] ss:$16 sps:$4 sm:$0xff]  }
  0x73   :  { %928 = vmatprep.subr.bf16.mxu0 %v3943_v35  ;;  %1010 = vmatprep.subr.bf16.mxu1 %v3945_v36  ;;  %v4014_v29 = vld [vmem:[#allocation5 + $0x22c] ss:$16 sps:$4 sm:$0xff]   ;;  %v4009_v30 = vld [vmem:[#allocation5 + $0x220] ss:$16 sps:$4 sm:$0xff]   ;;  %v4012_v31 = vld [vmem:[#allocation5 + $0x228] ss:$16 sps:$4 sm:$0xff]  }
  0x74   :  { %v4020_v33 = vld [vmem:[#allocation5 + $0x24c] ss:$16 sps:$4 sm:$0xff]   ;;  %v4023_v34 = vld [vmem:[#allocation5 + $0x264] ss:$16 sps:$4 sm:$0xff]   ;;  %v4021_v36 = vld [vmem:[#allocation5 + $0x260] ss:$16 sps:$4 sm:$0xff]  }
  0x75   :  { %v4026_v35 = vld [vmem:[#allocation5 + $0x26c] ss:$16 sps:$4 sm:$0xff]   ;;  %s4628_s1 = scalar_lea.vmem %s3390_s13, 128 }
  0x76   :  { %929 = vmatpush1.bf16.msra.mxu0 %v3947_v37  ;;  %1011 = vmatpush1.bf16.msra.mxu1 %v3948_v38  ;;  %v4024_v37 = vld [vmem:[#allocation5 + $0x268] ss:$16 sps:$4 sm:$0xff]   ;;  %v4029_v38 = vld [vmem:[#allocation5 + $0x284] ss:$16 sps:$4 sm:$0xff]   ;;  %p4629_p12 = scmp.ne.s32.totalorder %s3390_s13, %s4628_s1  ;;  %p4634_p0 = scmp.lt.s32.totalorder %s4628_s1, %s4628_s1 }
  0x77   :  { %930 = vmatprep.subr.bf16.mxu0 %v3949_v39  ;;  %1012 = vmatprep.subr.bf16.mxu1 %v3951_v40  ;;  %v4032_v39 = vld [vmem:[#allocation5 + $0x28c] ss:$16 sps:$4 sm:$0xff]   ;;  %v4027_v40 = vld [vmem:[#allocation5 + $0x280] ss:$16 sps:$4 sm:$0xff]  }
  0x78   :  { %p4635_p1 = por %p4634_p0, %p4633_p13 }
  0x7a   :  { %931 = vmatpush1.bf16.msra.mxu0 %v3953_v41  ;;  %1013 = vmatpush1.bf16.msra.mxu1 %v3954_v42  ;;  %v4030_v41 = vld [vmem:[#allocation5 + $0x288] ss:$16 sps:$4 sm:$0xff]   ;;  %v4035_v42 = vld [vmem:[#allocation5 + $0x2a4] ss:$16 sps:$4 sm:$0xff]   ;;  %p4636_p2 = pnand %p4635_p1, %p4629_p12 }
  0x7b   :  { %932 = vmatprep.subr.bf16.mxu0 %v3955_v43  ;;  %1014 = vmatprep.subr.bf16.mxu1 %v3957_v44  ;;  %v4038_v43 = vld [vmem:[#allocation5 + $0x2ac] ss:$16 sps:$4 sm:$0xff]   ;;  %v4033_v44 = vld [vmem:[#allocation5 + $0x2a0] ss:$16 sps:$4 sm:$0xff]  }
  0x7e   :  { %933 = vmatpush1.bf16.msra.mxu0 %v3959_v45  ;;  %1015 = vmatpush1.bf16.msra.mxu1 %v3960_v46  ;;  %v4036_v45 = vld [vmem:[#allocation5 + $0x2a8] ss:$16 sps:$4 sm:$0xff]   ;;  %v4041_v46 = vld [vmem:[#allocation5 + $0x2c4] ss:$16 sps:$4 sm:$0xff]  }
  0x7f   :  { %934 = vmatprep.subr.bf16.mxu0 %v3961_v47  ;;  %1016 = vmatprep.subr.bf16.mxu1 %v3963_v48  ;;  %v4044_v47 = vld [vmem:[#allocation5 + $0x2cc] ss:$16 sps:$4 sm:$0xff]   ;;  %v4039_v48 = vld [vmem:[#allocation5 + $0x2c0] ss:$16 sps:$4 sm:$0xff]  }
  0x82   :  { %935 = vmatpush1.bf16.msra.mxu0 %v3965_v49  ;;  %1017 = vmatpush1.bf16.msra.mxu1 %v3966_v50  ;;  %v4042_v49 = vld [vmem:[#allocation5 + $0x2c8] ss:$16 sps:$4 sm:$0xff]   ;;  %v4047_v50 = vld [vmem:[#allocation5 + $0x2e4] ss:$16 sps:$4 sm:$0xff]  }
  0x83   :  { %936 = vmatprep.subr.bf16.mxu0 %v3967_v51  ;;  %1018 = vmatprep.subr.bf16.mxu1 %v3969_v52  ;;  %v4050_v51 = vld [vmem:[#allocation5 + $0x2ec] ss:$16 sps:$4 sm:$0xff]   ;;  %v4045_v52 = vld [vmem:[#allocation5 + $0x2e0] ss:$16 sps:$4 sm:$0xff]  }
  0x86   :  { %937 = vmatpush1.bf16.msra.mxu0 %v3971_v53  ;;  %1019 = vmatpush1.bf16.msra.mxu1 %v3972_v54  ;;  %v4048_v53 = vld [vmem:[#allocation5 + $0x2e8] ss:$16 sps:$4 sm:$0xff]   ;;  %v4053_v54 = vld [vmem:[#allocation5 + $0x304] ss:$16 sps:$4 sm:$0xff]  }
  0x87   :  { %938 = vmatprep.subr.bf16.mxu0 %v3973_v55  ;;  %1020 = vmatprep.subr.bf16.mxu1 %v3975_v56  ;;  %v4056_v55 = vld [vmem:[#allocation5 + $0x30c] ss:$16 sps:$4 sm:$0xff]   ;;  %v4051_v56 = vld [vmem:[#allocation5 + $0x300] ss:$16 sps:$4 sm:$0xff]  }
  0x8a   :  { %939 = vmatpush1.bf16.msra.mxu0 %v3977_v57  ;;  %1021 = vmatpush1.bf16.msra.mxu1 %v3978_v58  ;;  %v4054_v57 = vld [vmem:[#allocation5 + $0x308] ss:$16 sps:$4 sm:$0xff]   ;;  %v4059_v58 = vld [vmem:[#allocation5 + $0x324] ss:$16 sps:$4 sm:$0xff]  }
  0x8b   :  { %940 = vmatprep.subr.bf16.mxu0 %v3979_v59  ;;  %1022 = vmatprep.subr.bf16.mxu1 %v3981_v60  ;;  %v4062_v59 = vld [vmem:[#allocation5 + $0x32c] ss:$16 sps:$4 sm:$0xff]   ;;  %v4057_v60 = vld [vmem:[#allocation5 + $0x320] ss:$16 sps:$4 sm:$0xff]  }
  0x8e   :  { %941 = vmatpush1.bf16.msra.mxu0 %v3983_v61  ;;  %1023 = vmatpush1.bf16.msra.mxu1 %v3984_v62  ;;  %v4060_v61 = vld [vmem:[#allocation5 + $0x328] ss:$16 sps:$4 sm:$0xff]   ;;  %v4065_v62 = vld [vmem:[#allocation5 + $0x344] ss:$16 sps:$4 sm:$0xff]  }
  0x8f   :  { %942 = vmatprep.subr.bf16.mxu0 %v3985_v63  ;;  %1024 = vmatprep.subr.bf16.mxu1 %v3987_v2  ;;  %v4068_v63 = vld [vmem:[#allocation5 + $0x34c] ss:$16 sps:$4 sm:$0xff]   ;;  %v4063_v2 = vld [vmem:[#allocation5 + $0x340] ss:$16 sps:$4 sm:$0xff]  }
  0x92   :  { %943 = vmatpush1.bf16.msra.mxu0 %v3989_v4  ;;  %1025 = vmatpush1.bf16.msra.mxu1 %v3990_v5  ;;  %v4066_v4 = vld [vmem:[#allocation5 + $0x348] ss:$16 sps:$4 sm:$0xff]   ;;  %v4071_v5 = vld [vmem:[#allocation5 + $0x364] ss:$16 sps:$4 sm:$0xff]  }
  0x93   :  { %944 = vmatprep.subr.bf16.mxu0 %v3991_v6  ;;  %1026 = vmatprep.subr.bf16.mxu1 %v3993_v7  ;;  %v4074_v6 = vld [vmem:[#allocation5 + $0x36c] ss:$16 sps:$4 sm:$0xff]   ;;  %v4069_v7 = vld [vmem:[#allocation5 + $0x360] ss:$16 sps:$4 sm:$0xff]  }
  0x96   :  { %945 = vmatpush1.bf16.msra.mxu0 %v3995_v8  ;;  %1027 = vmatpush1.bf16.msra.mxu1 %v3996_v9  ;;  %v4072_v8 = vld [vmem:[#allocation5 + $0x368] ss:$16 sps:$4 sm:$0xff]   ;;  %v4077_v9 = vld [vmem:[#allocation5 + $0x384] ss:$16 sps:$4 sm:$0xff]  }
  0x97   :  { %946 = vmatprep.subr.bf16.mxu0 %v3997_v10  ;;  %1028 = vmatprep.subr.bf16.mxu1 %v3999_v11  ;;  %v4080_v10 = vld [vmem:[#allocation5 + $0x38c] ss:$16 sps:$4 sm:$0xff]   ;;  %v4075_v11 = vld [vmem:[#allocation5 + $0x380] ss:$16 sps:$4 sm:$0xff]  }
  0x9a   :  { %947 = vmatpush1.bf16.msra.mxu0 %v4001_v12  ;;  %1029 = vmatpush1.bf16.msra.mxu1 %v4002_v13  ;;  %v4078_v12 = vld [vmem:[#allocation5 + $0x388] ss:$16 sps:$4 sm:$0xff]   ;;  %v4083_v13 = vld [vmem:[#allocation5 + $0x3a4] ss:$16 sps:$4 sm:$0xff]  }
  0x9b   :  { %957 = vmatprep.subr.bf16.mxu0 %v4005_v14  ;;  %1039 = vmatprep.subr.bf16.mxu1 %v4008_v15  ;;  %v4086_v14 = vld [vmem:[#allocation5 + $0x3ac] ss:$16 sps:$4 sm:$0xff]   ;;  %v4081_v15 = vld [vmem:[#allocation5 + $0x3a0] ss:$16 sps:$4 sm:$0xff]  }
  0xf0   :  { %v112_v16 = vpop.xlane.xlu0 %111 }
  0xf1   :  { %v114_v17 = vmul.f32 0.001953125, %v112_v16  ;;  %v4084_v16 = vld [vmem:[#allocation5 + $0x3a8] ss:$16 sps:$4 sm:$0xff]  }
  0xf3   :  { %v115_v18 = vadd.f32 1e-08, %v114_v17  ;;  %v4089_v17 = vld [vmem:[#allocation5 + $0x3c4] ss:$16 sps:$4 sm:$0xff]  }
  0xf5   :  { %4515 = vrsqrt.f32 %v115_v18  ;;  %v4092_v18 = vld [vmem:[#allocation5 + $0x3cc] ss:$16 sps:$4 sm:$0xff]  }
  0xff   :  { %v4516_v19 = vpop.eup %4515 }
 0x100   :  { %v4799_v20 = vmul.f32 0.00044194172, %v4516_v19  ;;  %v4087_v19 = vld [vmem:[#allocation5 + $0x3c0] ss:$16 sps:$4 sm:$0xff]  }
 0x102   :  { %v119_v21 = vmul.f32 %v4799_v20, %v4789_v1  ;;  %v118_v24 = vmul.f32 %v4799_v20, %v4787_v0  ;;  %v121_v25 = vmul.f32 %v4799_v20, %v4791_v3  ;;  %v4017_v1 = vld [vmem:[#allocation5 + $0x244] ss:$16 sps:$4 sm:$0xff]   ;;  %v4015_v0 = vld [vmem:[#allocation5 + $0x240] ss:$16 sps:$4 sm:$0xff]   ;;  %v4018_v3 = vld [vmem:[#allocation5 + $0x248] ss:$16 sps:$4 sm:$0xff]  }
 0x104   :  { %v123_v26 = vpack.c.bf16 %v119_v21, %v119_v21  ;;  %v122_v27 = vpack.c.bf16 %v118_v24, %v118_v24  ;;  %v125_v32 = vpack.c.bf16 %v121_v25, %v121_v25  ;;  %v4090_v21 = vld [vmem:[#allocation5 + $0x3c8] ss:$16 sps:$4 sm:$0xff]   ;;  %v4093_v24 = vld [vmem:[#allocation5 + $0x3e0] ss:$16 sps:$4 sm:$0xff]  }
 0x105   :  { %v4096_v25 = vld [vmem:[#allocation5 + $0x3e8] ss:$16 sps:$4 sm:$0xff]  }
 0x106   :  { %948 = vmatprep.mubr.bf16.mxu0 %v123_v26  ;;  %1030 = vmatprep.mubr.bf16.mxu1 %v123_v26  ;;  %v4517_v26 = vld [vmem:[#allocation2 + $0x10] sm:$0xff] }
 0x107   :  { %949 = vmatmul.mubr.bf16.vlgmr.msra.gmra.mrb[0].mxu0 %v122_v27  ;;  %1031 = vmatmul.mubr.bf16.vlgmr.msra.gmra.mrb[0].mxu1 %v122_v27  ;;  %v120_v27 = vmul.f32 %v4517_v26, %v4799_v20  ;;  %v4113_v20 = vld [vmem:[#allocation7 + $0x44] ss:$16 sps:$4 sm:$0xff]   ;;  %v4194_v26 = vld [vmem:[#allocation7 + $0x1ec] ss:$16 sps:$4 sm:$0xff]  }
 0x108   :  { %958 = vmatpush1.bf16.msra.mxu0 %v4003_v22  ;;  %1040 = vmatpush1.bf16.msra.mxu1 %v4006_v23  ;;  %v4095_v22 = vld [vmem:[#allocation5 + $0x3e4] ss:$16 sps:$4 sm:$0xff]   ;;  %v4098_v23 = vld [vmem:[#allocation5 + $0x3ec] ss:$16 sps:$4 sm:$0xff]  }
 0x109   :  { %989 = vmatprep.mubr.bf16.mxu0 %v125_v32  ;;  %1071 = vmatprep.mubr.bf16.mxu1 %v125_v32  ;;  %v124_v32 = vpack.c.bf16 %v120_v27, %v120_v27  ;;  %v4189_v27 = vld [vmem:[#allocation7 + $0x1e0] ss:$16 sps:$4 sm:$0xff]  }
 0x10a   :  { %959 = vmatprep.subr.bf16.mxu0 %v4011_v28  ;;  %1041 = vmatprep.subr.bf16.mxu1 %v4014_v29  ;;  %v4101_v28 = vld [vmem:[#allocation7 + $0x4] ss:$16 sps:$4 sm:$0xff]   ;;  %v4104_v29 = vld [vmem:[#allocation7 + $0xc] ss:$16 sps:$4 sm:$0xff]  }
 0x10c   :  { %960 = vmatpush1.bf16.msra.mxu0 %v4009_v30  ;;  %1042 = vmatpush1.bf16.msra.mxu1 %v4012_v31  ;;  %v4099_v30 = vld [vmem:[#allocation7] ss:$16 sps:$4 sm:$0xff]   ;;  %v4102_v31 = vld [vmem:[#allocation7 + $0x8] ss:$16 sps:$4 sm:$0xff]  }
 0x10d   :  { %961 = vmatprep.subr.bf16.mxu0 %v4017_v1  ;;  %1043 = vmatprep.subr.bf16.mxu1 %v4020_v33  ;;  %v4107_v1 = vld [vmem:[#allocation7 + $0x24] ss:$16 sps:$4 sm:$0xff]   ;;  %v4110_v33 = vld [vmem:[#allocation7 + $0x2c] ss:$16 sps:$4 sm:$0xff]  }
 0x110   :  { %962 = vmatpush1.bf16.msra.mxu0 %v4015_v0  ;;  %1044 = vmatpush1.bf16.msra.mxu1 %v4018_v3  ;;  %v4105_v0 = vld [vmem:[#allocation7 + $0x20] ss:$16 sps:$4 sm:$0xff]   ;;  %v4108_v3 = vld [vmem:[#allocation7 + $0x28] ss:$16 sps:$4 sm:$0xff]  }
 0x111   :  { %963 = vmatprep.subr.bf16.mxu0 %v4023_v34  ;;  %1045 = vmatprep.subr.bf16.mxu1 %v4026_v35  ;;  %v4116_v34 = vld [vmem:[#allocation7 + $0x4c] ss:$16 sps:$4 sm:$0xff]   ;;  %v4111_v35 = vld [vmem:[#allocation7 + $0x40] ss:$16 sps:$4 sm:$0xff]  }
 0x114   :  { %964 = vmatpush1.bf16.msra.mxu0 %v4021_v36  ;;  %1046 = vmatpush1.bf16.msra.mxu1 %v4024_v37  ;;  %v4114_v36 = vld [vmem:[#allocation7 + $0x48] ss:$16 sps:$4 sm:$0xff]   ;;  %v4119_v37 = vld [vmem:[#allocation7 + $0x64] ss:$16 sps:$4 sm:$0xff]  }
 0x115   :  { %965 = vmatprep.subr.bf16.mxu0 %v4029_v38  ;;  %1047 = vmatprep.subr.bf16.mxu1 %v4032_v39  ;;  %v4122_v38 = vld [vmem:[#allocation7 + $0x6c] ss:$16 sps:$4 sm:$0xff]   ;;  %v4117_v39 = vld [vmem:[#allocation7 + $0x60] ss:$16 sps:$4 sm:$0xff]  }
 0x118   :  { %966 = vmatpush1.bf16.msra.mxu0 %v4027_v40  ;;  %1048 = vmatpush1.bf16.msra.mxu1 %v4030_v41  ;;  %v4120_v40 = vld [vmem:[#allocation7 + $0x68] ss:$16 sps:$4 sm:$0xff]   ;;  %v4125_v41 = vld [vmem:[#allocation7 + $0x84] ss:$16 sps:$4 sm:$0xff]  }
 0x119   :  { %967 = vmatprep.subr.bf16.mxu0 %v4035_v42  ;;  %1049 = vmatprep.subr.bf16.mxu1 %v4038_v43  ;;  %v4128_v42 = vld [vmem:[#allocation7 + $0x8c] ss:$16 sps:$4 sm:$0xff]   ;;  %v4123_v43 = vld [vmem:[#allocation7 + $0x80] ss:$16 sps:$4 sm:$0xff]  }
 0x11c   :  { %968 = vmatpush1.bf16.msra.mxu0 %v4033_v44  ;;  %1050 = vmatpush1.bf16.msra.mxu1 %v4036_v45  ;;  %v4126_v44 = vld [vmem:[#allocation7 + $0x88] ss:$16 sps:$4 sm:$0xff]   ;;  %v4131_v45 = vld [vmem:[#allocation7 + $0xa4] ss:$16 sps:$4 sm:$0xff]  }
 0x11d   :  { %969 = vmatprep.subr.bf16.mxu0 %v4041_v46  ;;  %1051 = vmatprep.subr.bf16.mxu1 %v4044_v47  ;;  %v4134_v46 = vld [vmem:[#allocation7 + $0xac] ss:$16 sps:$4 sm:$0xff]   ;;  %v4129_v47 = vld [vmem:[#allocation7 + $0xa0] ss:$16 sps:$4 sm:$0xff]  }
 0x120   :  { %970 = vmatpush1.bf16.msra.mxu0 %v4039_v48  ;;  %1052 = vmatpush1.bf16.msra.mxu1 %v4042_v49  ;;  %v4132_v48 = vld [vmem:[#allocation7 + $0xa8] ss:$16 sps:$4 sm:$0xff]   ;;  %v4137_v49 = vld [vmem:[#allocation7 + $0xc4] ss:$16 sps:$4 sm:$0xff]  }
 0x121   :  { %971 = vmatprep.subr.bf16.mxu0 %v4047_v50  ;;  %1053 = vmatprep.subr.bf16.mxu1 %v4050_v51  ;;  %v4140_v50 = vld [vmem:[#allocation7 + $0xcc] ss:$16 sps:$4 sm:$0xff]   ;;  %v4135_v51 = vld [vmem:[#allocation7 + $0xc0] ss:$16 sps:$4 sm:$0xff]  }
 0x124   :  { %972 = vmatpush1.bf16.msra.mxu0 %v4045_v52  ;;  %1054 = vmatpush1.bf16.msra.mxu1 %v4048_v53  ;;  %v4138_v52 = vld [vmem:[#allocation7 + $0xc8] ss:$16 sps:$4 sm:$0xff]   ;;  %v4143_v53 = vld [vmem:[#allocation7 + $0xe4] ss:$16 sps:$4 sm:$0xff]  }
 0x125   :  { %973 = vmatprep.subr.bf16.mxu0 %v4053_v54  ;;  %1055 = vmatprep.subr.bf16.mxu1 %v4056_v55  ;;  %v4146_v54 = vld [vmem:[#allocation7 + $0xec] ss:$16 sps:$4 sm:$0xff]   ;;  %v4141_v55 = vld [vmem:[#allocation7 + $0xe0] ss:$16 sps:$4 sm:$0xff]  }
 0x128   :  { %974 = vmatpush1.bf16.msra.mxu0 %v4051_v56  ;;  %1056 = vmatpush1.bf16.msra.mxu1 %v4054_v57  ;;  %v4144_v56 = vld [vmem:[#allocation7 + $0xe8] ss:$16 sps:$4 sm:$0xff]   ;;  %v4149_v57 = vld [vmem:[#allocation7 + $0x104] ss:$16 sps:$4 sm:$0xff]  }
 0x129   :  { %975 = vmatprep.subr.bf16.mxu0 %v4059_v58  ;;  %1057 = vmatprep.subr.bf16.mxu1 %v4062_v59  ;;  %v4152_v58 = vld [vmem:[#allocation7 + $0x10c] ss:$16 sps:$4 sm:$0xff]   ;;  %v4147_v59 = vld [vmem:[#allocation7 + $0x100] ss:$16 sps:$4 sm:$0xff]  }
 0x12c   :  { %976 = vmatpush1.bf16.msra.mxu0 %v4057_v60  ;;  %1058 = vmatpush1.bf16.msra.mxu1 %v4060_v61  ;;  %v4150_v60 = vld [vmem:[#allocation7 + $0x108] ss:$16 sps:$4 sm:$0xff]   ;;  %v4155_v61 = vld [vmem:[#allocation7 + $0x124] ss:$16 sps:$4 sm:$0xff]  }
 0x12d   :  { %977 = vmatprep.subr.bf16.mxu0 %v4065_v62  ;;  %1059 = vmatprep.subr.bf16.mxu1 %v4068_v63  ;;  %v4158_v62 = vld [vmem:[#allocation7 + $0x12c] ss:$16 sps:$4 sm:$0xff]   ;;  %v4153_v63 = vld [vmem:[#allocation7 + $0x120] ss:$16 sps:$4 sm:$0xff]  }
 0x130   :  { %978 = vmatpush1.bf16.msra.mxu0 %v4063_v2  ;;  %1060 = vmatpush1.bf16.msra.mxu1 %v4066_v4  ;;  %v4156_v2 = vld [vmem:[#allocation7 + $0x128] ss:$16 sps:$4 sm:$0xff]   ;;  %v4161_v4 = vld [vmem:[#allocation7 + $0x144] ss:$16 sps:$4 sm:$0xff]  }
 0x131   :  { %979 = vmatprep.subr.bf16.mxu0 %v4071_v5  ;;  %1061 = vmatprep.subr.bf16.mxu1 %v4074_v6  ;;  %v4164_v5 = vld [vmem:[#allocation7 + $0x14c] ss:$16 sps:$4 sm:$0xff]   ;;  %v4159_v6 = vld [vmem:[#allocation7 + $0x140] ss:$16 sps:$4 sm:$0xff]  }
 0x134   :  { %980 = vmatpush1.bf16.msra.mxu0 %v4069_v7  ;;  %1062 = vmatpush1.bf16.msra.mxu1 %v4072_v8  ;;  %v4162_v7 = vld [vmem:[#allocation7 + $0x148] ss:$16 sps:$4 sm:$0xff]   ;;  %v4167_v8 = vld [vmem:[#allocation7 + $0x164] ss:$16 sps:$4 sm:$0xff]  }
 0x135   :  { %981 = vmatprep.subr.bf16.mxu0 %v4077_v9  ;;  %1063 = vmatprep.subr.bf16.mxu1 %v4080_v10  ;;  %v4170_v9 = vld [vmem:[#allocation7 + $0x16c] ss:$16 sps:$4 sm:$0xff]   ;;  %v4165_v10 = vld [vmem:[#allocation7 + $0x160] ss:$16 sps:$4 sm:$0xff]  }
 0x138   :  { %982 = vmatpush1.bf16.msra.mxu0 %v4075_v11  ;;  %1064 = vmatpush1.bf16.msra.mxu1 %v4078_v12  ;;  %v4168_v11 = vld [vmem:[#allocation7 + $0x168] ss:$16 sps:$4 sm:$0xff]   ;;  %v4173_v12 = vld [vmem:[#allocation7 + $0x184] ss:$16 sps:$4 sm:$0xff]  }
 0x139   :  { %983 = vmatprep.subr.bf16.mxu0 %v4083_v13  ;;  %1065 = vmatprep.subr.bf16.mxu1 %v4086_v14  ;;  %v4176_v13 = vld [vmem:[#allocation7 + $0x18c] ss:$16 sps:$4 sm:$0xff]   ;;  %v4171_v14 = vld [vmem:[#allocation7 + $0x180] ss:$16 sps:$4 sm:$0xff]  }
 0x13c   :  { %984 = vmatpush1.bf16.msra.mxu0 %v4081_v15  ;;  %1066 = vmatpush1.bf16.msra.mxu1 %v4084_v16  ;;  %v4174_v15 = vld [vmem:[#allocation7 + $0x188] ss:$16 sps:$4 sm:$0xff]   ;;  %v4179_v16 = vld [vmem:[#allocation7 + $0x1a4] ss:$16 sps:$4 sm:$0xff]  }
 0x13d   :  { %985 = vmatprep.subr.bf16.mxu0 %v4089_v17  ;;  %1067 = vmatprep.subr.bf16.mxu1 %v4092_v18  ;;  %v4182_v17 = vld [vmem:[#allocation7 + $0x1ac] ss:$16 sps:$4 sm:$0xff]   ;;  %v4177_v18 = vld [vmem:[#allocation7 + $0x1a0] ss:$16 sps:$4 sm:$0xff]  }
 0x140   :  { %986 = vmatpush1.bf16.msra.mxu0 %v4087_v19  ;;  %1068 = vmatpush1.bf16.msra.mxu1 %v4090_v21  ;;  %v4180_v19 = vld [vmem:[#allocation7 + $0x1a8] ss:$16 sps:$4 sm:$0xff]   ;;  %v4185_v21 = vld [vmem:[#allocation7 + $0x1c4] ss:$16 sps:$4 sm:$0xff]  }
 0x141   :  { %987 = vmatprep.subr.bf16.mxu0 %v4095_v22  ;;  %1069 = vmatprep.subr.bf16.mxu1 %v4098_v23  ;;  %v4188_v22 = vld [vmem:[#allocation7 + $0x1cc] ss:$16 sps:$4 sm:$0xff]   ;;  %v4183_v23 = vld [vmem:[#allocation7 + $0x1c0] ss:$16 sps:$4 sm:$0xff]  }
 0x144   :  { %988 = vmatpush1.bf16.msra.mxu0 %v4093_v24  ;;  %1070 = vmatpush1.bf16.msra.mxu1 %v4096_v25  ;;  %v4186_v24 = vld [vmem:[#allocation7 + $0x1c8] ss:$16 sps:$4 sm:$0xff]   ;;  %v4191_v25 = vld [vmem:[#allocation7 + $0x1e4] ss:$16 sps:$4 sm:$0xff]  }
 0x145   :  { %1886 = vmatprep.subr.bf16.mxu0 %v4101_v28  ;;  %1968 = vmatprep.subr.bf16.mxu1 %v4104_v29  ;;  %v4192_v28 = vld [vmem:[#allocation7 + $0x1e8] ss:$16 sps:$4 sm:$0xff]   ;;  %v4197_v29 = vld [vmem:[#allocation7 + $0x204] ss:$16 sps:$4 sm:$0xff]  }
 0x147   :  { %990 = vmatmul.mubr.bf16.vlgmr.msra.gmra.mrb[0].mxu0 %v124_v32  ;;  %1072 = vmatmul.mubr.bf16.vlgmr.msra.gmra.mrb[0].mxu1 %v124_v32 }
 0x148   :  { %1887 = vmatpush1.bf16.msra.mxu0 %v4099_v30  ;;  %1969 = vmatpush1.bf16.msra.mxu1 %v4102_v31  ;;  %v4200_v30 = vld [vmem:[#allocation7 + $0x20c] ss:$16 sps:$4 sm:$0xff]   ;;  %v256_v31 = vlaneseq }
 0x149   :  { %1888 = vmatprep.subr.bf16.mxu0 %v4107_v1  ;;  %1970 = vmatprep.subr.bf16.mxu1 %v4110_v33  ;;  %v4816_v33 = vld [vmem:[%s4878_s2] sm:$0xf] }
 0x14a   :  { %v4808_v32 = vshrl.u32 %v256_v31, 7  ;;  %v4243_v31 = vld [vmem:[#allocation7 + $0x300] ss:$16 sps:$4 sm:$0xff]  }
 0x14c   :  { %1889 = vmatpush1.bf16.msra.mxu0 %v4105_v0  ;;  %1971 = vmatpush1.bf16.msra.mxu1 %v4108_v3  ;;  %v4811_v1 = vsub.s32 0, %v4808_v32  ;;  %v4819_v0 = vsub.s32 1, %v4808_v32  ;;  %v4822_v3 = vsub.s32 3, %v4808_v32 }
 0x14d   :  { %1890 = vmatprep.subr.bf16.mxu0 %v4113_v20  ;;  %1972 = vmatprep.subr.bf16.mxu1 %v4116_v34 }
 0x14e   :  { %v259_v20 = vrot.slane %v4816_v33, %v4811_v1  ;;  %v263_v34 = vrot.slane %v4816_v33, %v4819_v0 }
 0x150   :  { %1891 = vmatpush1.bf16.msra.mxu0 %v4111_v35  ;;  %1973 = vmatpush1.bf16.msra.mxu1 %v4114_v36  ;;  %v271_v35 = vrot.slane %v4816_v33, %v4822_v3 }
 0x151   :  { %1892 = vmatprep.subr.bf16.mxu0 %v4119_v37  ;;  %1974 = vmatprep.subr.bf16.mxu1 %v4122_v38 }
 0x154   :  { %1893 = vmatpush1.bf16.msra.mxu0 %v4117_v39  ;;  %1975 = vmatpush1.bf16.msra.mxu1 %v4120_v40 }
 0x155   :  { %1894 = vmatprep.subr.bf16.mxu0 %v4125_v41  ;;  %1976 = vmatprep.subr.bf16.mxu1 %v4128_v42 }
 0x158   :  { %1895 = vmatpush1.bf16.msra.mxu0 %v4123_v43  ;;  %1977 = vmatpush1.bf16.msra.mxu1 %v4126_v44 }
 0x159   :  { %1896 = vmatprep.subr.bf16.mxu0 %v4131_v45  ;;  %1978 = vmatprep.subr.bf16.mxu1 %v4134_v46 }
 0x15c   :  { %1897 = vmatpush1.bf16.msra.mxu0 %v4129_v47  ;;  %1979 = vmatpush1.bf16.msra.mxu1 %v4132_v48 }
 0x15d   :  { %1898 = vmatprep.subr.bf16.mxu0 %v4137_v49  ;;  %1980 = vmatprep.subr.bf16.mxu1 %v4140_v50 }
 0x160   :  { %1899 = vmatpush1.bf16.msra.mxu0 %v4135_v51  ;;  %1981 = vmatpush1.bf16.msra.mxu1 %v4138_v52 }
 0x161   :  { %1900 = vmatprep.subr.bf16.mxu0 %v4143_v53  ;;  %1982 = vmatprep.subr.bf16.mxu1 %v4146_v54 }
 0x164   :  { %1901 = vmatpush1.bf16.msra.mxu0 %v4141_v55  ;;  %1983 = vmatpush1.bf16.msra.mxu1 %v4144_v56 }
 0x165   :  { %1902 = vmatprep.subr.bf16.mxu0 %v4149_v57  ;;  %1984 = vmatprep.subr.bf16.mxu1 %v4152_v58  ;;  %v4195_v57 = vld [vmem:[#allocation7 + $0x200] ss:$16 sps:$4 sm:$0xff]   ;;  %v4198_v58 = vld [vmem:[#allocation7 + $0x208] ss:$16 sps:$4 sm:$0xff]  }
 0x168   :  { %1903 = vmatpush1.bf16.msra.mxu0 %v4147_v59  ;;  %1985 = vmatpush1.bf16.msra.mxu1 %v4150_v60  ;;  %v4203_v60 = vld [vmem:[#allocation7 + $0x224] ss:$16 sps:$4 sm:$0xff]  }
 0x169   :  { %1904 = vmatprep.subr.bf16.mxu0 %v4155_v61  ;;  %1986 = vmatprep.subr.bf16.mxu1 %v4158_v62  ;;  %v4206_v61 = vld [vmem:[#allocation7 + $0x22c] ss:$16 sps:$4 sm:$0xff]  }
 0x16c   :  { %1905 = vmatpush1.bf16.msra.mxu0 %v4153_v63  ;;  %1987 = vmatpush1.bf16.msra.mxu1 %v4156_v2  ;;  %v4201_v63 = vld [vmem:[#allocation7 + $0x220] ss:$16 sps:$4 sm:$0xff]   ;;  %v4204_v2 = vld [vmem:[#allocation7 + $0x228] ss:$16 sps:$4 sm:$0xff]  }
 0x16d   :  { %1906 = vmatprep.subr.bf16.mxu0 %v4161_v4  ;;  %1988 = vmatprep.subr.bf16.mxu1 %v4164_v5  ;;  %v4209_v4 = vld [vmem:[#allocation7 + $0x244] ss:$16 sps:$4 sm:$0xff]   ;;  %v4212_v5 = vld [vmem:[#allocation7 + $0x24c] ss:$16 sps:$4 sm:$0xff]  }
 0x170   :  { %1907 = vmatpush1.bf16.msra.mxu0 %v4159_v6  ;;  %1989 = vmatpush1.bf16.msra.mxu1 %v4162_v7  ;;  %v4207_v6 = vld [vmem:[#allocation7 + $0x240] ss:$16 sps:$4 sm:$0xff]   ;;  %v4210_v7 = vld [vmem:[#allocation7 + $0x248] ss:$16 sps:$4 sm:$0xff]  }
 0x171   :  { %1908 = vmatprep.subr.bf16.mxu0 %v4167_v8  ;;  %1990 = vmatprep.subr.bf16.mxu1 %v4170_v9  ;;  %v4215_v8 = vld [vmem:[#allocation7 + $0x264] ss:$16 sps:$4 sm:$0xff]   ;;  %v4218_v9 = vld [vmem:[#allocation7 + $0x26c] ss:$16 sps:$4 sm:$0xff]  }
 0x174   :  { %1909 = vmatpush1.bf16.msra.mxu0 %v4165_v10  ;;  %1991 = vmatpush1.bf16.msra.mxu1 %v4168_v11  ;;  %v4213_v10 = vld [vmem:[#allocation7 + $0x260] ss:$16 sps:$4 sm:$0xff]   ;;  %v4216_v11 = vld [vmem:[#allocation7 + $0x268] ss:$16 sps:$4 sm:$0xff]  }
 0x175   :  { %1910 = vmatprep.subr.bf16.mxu0 %v4173_v12  ;;  %1992 = vmatprep.subr.bf16.mxu1 %v4176_v13  ;;  %v4221_v12 = vld [vmem:[#allocation7 + $0x284] ss:$16 sps:$4 sm:$0xff]   ;;  %v4224_v13 = vld [vmem:[#allocation7 + $0x28c] ss:$16 sps:$4 sm:$0xff]  }
 0x178   :  { %1911 = vmatpush1.bf16.msra.mxu0 %v4171_v14  ;;  %1993 = vmatpush1.bf16.msra.mxu1 %v4174_v15  ;;  %v4219_v14 = vld [vmem:[#allocation7 + $0x280] ss:$16 sps:$4 sm:$0xff]   ;;  %v4222_v15 = vld [vmem:[#allocation7 + $0x288] ss:$16 sps:$4 sm:$0xff]  }
 0x179   :  { %1912 = vmatprep.subr.bf16.mxu0 %v4179_v16  ;;  %1994 = vmatprep.subr.bf16.mxu1 %v4182_v17  ;;  %v4227_v16 = vld [vmem:[#allocation7 + $0x2a4] ss:$16 sps:$4 sm:$0xff]   ;;  %v4230_v17 = vld [vmem:[#allocation7 + $0x2ac] ss:$16 sps:$4 sm:$0xff]  }
 0x17c   :  { %1913 = vmatpush1.bf16.msra.mxu0 %v4177_v18  ;;  %1995 = vmatpush1.bf16.msra.mxu1 %v4180_v19  ;;  %v4225_v18 = vld [vmem:[#allocation7 + $0x2a0] ss:$16 sps:$4 sm:$0xff]   ;;  %v4228_v19 = vld [vmem:[#allocation7 + $0x2a8] ss:$16 sps:$4 sm:$0xff]  }
 0x17d   :  { %1914 = vmatprep.subr.bf16.mxu0 %v4185_v21  ;;  %1996 = vmatprep.subr.bf16.mxu1 %v4188_v22  ;;  %v4233_v21 = vld [vmem:[#allocation7 + $0x2c4] ss:$16 sps:$4 sm:$0xff]   ;;  %v4236_v22 = vld [vmem:[#allocation7 + $0x2cc] ss:$16 sps:$4 sm:$0xff]  }
 0x180   :  { %1915 = vmatpush1.bf16.msra.mxu0 %v4183_v23  ;;  %1997 = vmatpush1.bf16.msra.mxu1 %v4186_v24  ;;  %v4231_v23 = vld [vmem:[#allocation7 + $0x2c0] ss:$16 sps:$4 sm:$0xff]   ;;  %v4234_v24 = vld [vmem:[#allocation7 + $0x2c8] ss:$16 sps:$4 sm:$0xff]  }
 0x181   :  { %1916 = vmatprep.subr.bf16.mxu0 %v4191_v25  ;;  %1998 = vmatprep.subr.bf16.mxu1 %v4194_v26  ;;  %v4239_v25 = vld [vmem:[#allocation7 + $0x2e4] ss:$16 sps:$4 sm:$0xff]   ;;  %v4242_v26 = vld [vmem:[#allocation7 + $0x2ec] ss:$16 sps:$4 sm:$0xff]  }
 0x184   :  { %1917 = vmatpush1.bf16.msra.mxu0 %v4189_v27  ;;  %1999 = vmatpush1.bf16.msra.mxu1 %v4192_v28  ;;  %v4237_v27 = vld [vmem:[#allocation7 + $0x2e0] ss:$16 sps:$4 sm:$0xff]   ;;  %v4240_v28 = vld [vmem:[#allocation7 + $0x2e8] ss:$16 sps:$4 sm:$0xff]  }
 0x185   :  { %1927 = vmatprep.subr.bf16.mxu0 %v4197_v29  ;;  %2009 = vmatprep.subr.bf16.mxu1 %v4200_v30  ;;  %v4245_v29 = vld [vmem:[#allocation7 + $0x304] ss:$16 sps:$4 sm:$0xff]   ;;  %v4248_v30 = vld [vmem:[#allocation7 + $0x30c] ss:$16 sps:$4 sm:$0xff]  }
 0x21a   :  { %v991_v36 = vpop.f32.mrb[0].mxu0  ;;  %v4830_v37 = vpop.f32.mrb[0].mxu1 }
 0x21b   :  { %v3861_v38 = vadd.f32 %v991_v36, %v259_v20  ;;  %v993_v39 = vpop.f32.mrb[1].mxu0  ;;  %v1075_v40 = vpop.f32.mrb[1].mxu1  ;;  %v4246_v20 = vld [vmem:[#allocation7 + $0x308] ss:$16 sps:$4 sm:$0xff]   ;;  %v4249_v36 = vld [vmem:[#allocation7 + $0x320] ss:$16 sps:$4 sm:$0xff]  }
 0x21c   :  { %v3862_v41 = vadd.f32 %v993_v39, %v263_v34  ;;  %v3864_v42 = vadd.f32 %v1075_v40, %v271_v35  ;;  %v995_v43 = vpop.f32.mrb[2].mxu0  ;;  %v1077_v44 = vpop.f32.mrb[2].mxu1  ;;  %v4251_v34 = vld [vmem:[#allocation7 + $0x324] ss:$16 sps:$4 sm:$0xff]   ;;  %v4254_v35 = vld [vmem:[#allocation7 + $0x32c] ss:$16 sps:$4 sm:$0xff]  }
 0x21d   :  { %v1080_v45 = vmul.f32 0.2, %v3861_v38  ;;  %v996_v46 = vpop.f32.mrb[3].mxu0  ;;  %v1078_v47 = vpop.f32.mrb[3].mxu1  ;;  %v4257_v39 = vld [vmem:[#allocation7 + $0x344] ss:$16 sps:$4 sm:$0xff]  }
 0x21e   :  { %v1081_v48 = vmul.f32 0.2, %v3862_v41  ;;  %v1083_v49 = vmul.f32 0.2, %v3864_v42  ;;  %v4260_v40 = vld [vmem:[#allocation7 + $0x34c] ss:$16 sps:$4 sm:$0xff]  }
 0x21f   :  { %v1084_v50 = vmax.f32 %v3861_v38, %v1080_v45  ;;  %v4252_v38 = vld [vmem:[#allocation7 + $0x328] ss:$16 sps:$4 sm:$0xff]   ;;  %v4833_v43 = vsub.s32 2, %v4808_v32  ;;  %v4263_v44 = vld [vmem:[#allocation7 + $0x364] ss:$16 sps:$4 sm:$0xff]  }
 0x220   :  { %v1085_v51 = vmax.f32 %v3862_v41, %v1081_v48  ;;  %v1087_v52 = vmax.f32 %v3864_v42, %v1083_v49  ;;  %v4255_v41 = vld [vmem:[#allocation7 + $0x340] ss:$16 sps:$4 sm:$0xff]   ;;  %v4258_v42 = vld [vmem:[#allocation7 + $0x348] ss:$16 sps:$4 sm:$0xff]   ;;  %v4266_v45 = vld [vmem:[#allocation7 + $0x36c] ss:$16 sps:$4 sm:$0xff]  }
 0x221   :  { %v1088_v53 = vmul.f32 0.000625, %v1084_v50  ;;  %v4261_v46 = vld [vmem:[#allocation7 + $0x360] ss:$16 sps:$4 sm:$0xff]   ;;  %v4264_v47 = vld [vmem:[#allocation7 + $0x368] ss:$16 sps:$4 sm:$0xff]   ;;  %v267_v48 = vrot.slane %v4816_v33, %v4833_v43 }
 0x222   :  { %v1089_v54 = vmul.f32 0.000625, %v1085_v51  ;;  %v1091_v55 = vmul.f32 0.000625, %v1087_v52  ;;  %v4269_v49 = vld [vmem:[#allocation7 + $0x384] ss:$16 sps:$4 sm:$0xff]  }
 0x223   :  { %v1092_v59 = vpack.c.bf16 %v1088_v53, %v1088_v53  ;;  %v4272_v50 = vld [vmem:[#allocation7 + $0x38c] ss:$16 sps:$4 sm:$0xff]   ;;  %v4267_v51 = vld [vmem:[#allocation7 + $0x380] ss:$16 sps:$4 sm:$0xff]   ;;  %v4270_v32 = vld [vmem:[#allocation7 + $0x388] ss:$16 sps:$4 sm:$0xff]   ;;  %v3863_v52 = vadd.f32 %v4830_v37, %v267_v48 }
 0x224   :  { %v1093_v56 = vpack.c.bf16 %v1089_v54, %v1089_v54  ;;  %v1095_v62 = vpack.c.bf16 %v1091_v55, %v1091_v55  ;;  %v4275_v53 = vld [vmem:[#allocation7 + $0x3a4] ss:$16 sps:$4 sm:$0xff]   ;;  %v4278_v54 = vld [vmem:[#allocation7 + $0x3ac] ss:$16 sps:$4 sm:$0xff]   ;;  %v4273_v55 = vld [vmem:[#allocation7 + $0x3a0] ss:$16 sps:$4 sm:$0xff]  }
 0x225   :  { %v4281_v33 = vld [vmem:[#allocation7 + $0x3c4] ss:$16 sps:$4 sm:$0xff]   ;;  %v4345_v48 = vld [vmem:[#allocation8 + $0x120] ss:$16 sps:$4 sm:$0xff]  }
 0x226   :  { %1918 = vmatprep.mubr.bf16.mxu0 %v1093_v56  ;;  %2000 = vmatprep.mubr.bf16.mxu1 %v1093_v56  ;;  %v4276_v56 = vld [vmem:[#allocation7 + $0x3a8] ss:$16 sps:$4 sm:$0xff]   ;;  %v4287_v37 = vld [vmem:[#allocation7 + $0x3e4] ss:$16 sps:$4 sm:$0xff]  }
 0x227   :  { %1919 = vmatmul.mubr.bf16.vlgmr.msra.gmra.mrb[4].mxu0 %v1092_v59  ;;  %2001 = vmatmul.mubr.bf16.vlgmr.msra.gmra.mrb[4].mxu1 %v1092_v59  ;;  %v4279_v59 = vld [vmem:[#allocation7 + $0x3c0] ss:$16 sps:$4 sm:$0xff]  }
 0x228   :  { %1928 = vmatpush1.bf16.msra.mxu0 %v4195_v57  ;;  %2010 = vmatpush1.bf16.msra.mxu1 %v4198_v58  ;;  %v1082_v57 = vmul.f32 0.2, %v3863_v52  ;;  %v4284_v58 = vld [vmem:[#allocation7 + $0x3cc] ss:$16 sps:$4 sm:$0xff]  }
 0x229   :  { %1959 = vmatprep.mubr.bf16.mxu0 %v1095_v62  ;;  %2041 = vmatprep.mubr.bf16.mxu1 %v1095_v62  ;;  %v4290_v62 = vld [vmem:[#allocation7 + $0x3ec] ss:$16 sps:$4 sm:$0xff]  }
 0x22a   :  { %1929 = vmatprep.subr.bf16.mxu0 %v4203_v60  ;;  %2011 = vmatprep.subr.bf16.mxu1 %v4206_v61  ;;  %v4282_v60 = vld [vmem:[#allocation7 + $0x3c8] ss:$16 sps:$4 sm:$0xff]   ;;  %v1086_v61 = vmax.f32 %v3863_v52, %v1082_v57  ;;  %v4365_v57 = vld [vmem:[#allocation8 + $0x184] ss:$16 sps:$4 sm:$0xff]  }
 0x22b   :  { %v4354_v52 = vld [vmem:[#allocation8 + $0x148] ss:$16 sps:$4 sm:$0xff]  }
 0x22c   :  { %1930 = vmatpush1.bf16.msra.mxu0 %v4201_v63  ;;  %2012 = vmatpush1.bf16.msra.mxu1 %v4204_v2  ;;  %v4285_v63 = vld [vmem:[#allocation7 + $0x3e0] ss:$16 sps:$4 sm:$0xff]   ;;  %v4288_v2 = vld [vmem:[#allocation7 + $0x3e8] ss:$16 sps:$4 sm:$0xff]  }
 0x22d   :  { %1931 = vmatprep.subr.bf16.mxu0 %v4209_v4  ;;  %2013 = vmatprep.subr.bf16.mxu1 %v4212_v5  ;;  %v1090_v4 = vmul.f32 0.000625, %v1086_v61  ;;  %v4293_v5 = vld [vmem:[#allocation8 + $0x4] ss:$16 sps:$4 sm:$0xff]   ;;  %v4374_v61 = vld [vmem:[#allocation8 + $0x1ac] ss:$16 sps:$4 sm:$0xff]  }
 0x230   :  { %1932 = vmatpush1.bf16.msra.mxu0 %v4207_v6  ;;  %2014 = vmatpush1.bf16.msra.mxu1 %v4210_v7  ;;  %v4296_v6 = vld [vmem:[#allocation8 + $0xc] ss:$16 sps:$4 sm:$0xff]   ;;  %v4291_v7 = vld [vmem:[#allocation8] ss:$16 sps:$4 sm:$0xff]  }
 0x231   :  { %1933 = vmatprep.subr.bf16.mxu0 %v4215_v8  ;;  %2015 = vmatprep.subr.bf16.mxu1 %v4218_v9  ;;  %v4294_v8 = vld [vmem:[#allocation8 + $0x8] ss:$16 sps:$4 sm:$0xff]   ;;  %v1094_v9 = vpack.c.bf16 %v1090_v4, %v1090_v4  ;;  %v4375_v4 = vld [vmem:[#allocation8 + $0x1c0] ss:$16 sps:$4 sm:$0xff]  }
 0x234   :  { %1934 = vmatpush1.bf16.msra.mxu0 %v4213_v10  ;;  %2016 = vmatpush1.bf16.msra.mxu1 %v4216_v11  ;;  %v4299_v10 = vld [vmem:[#allocation8 + $0x24] ss:$16 sps:$4 sm:$0xff]   ;;  %v4302_v11 = vld [vmem:[#allocation8 + $0x2c] ss:$16 sps:$4 sm:$0xff]  }
 0x235   :  { %1935 = vmatprep.subr.bf16.mxu0 %v4221_v12  ;;  %2017 = vmatprep.subr.bf16.mxu1 %v4224_v13  ;;  %v4297_v12 = vld [vmem:[#allocation8 + $0x20] ss:$16 sps:$4 sm:$0xff]   ;;  %v4300_v13 = vld [vmem:[#allocation8 + $0x28] ss:$16 sps:$4 sm:$0xff]  }
 0x238   :  { %1936 = vmatpush1.bf16.msra.mxu0 %v4219_v14  ;;  %2018 = vmatpush1.bf16.msra.mxu1 %v4222_v15  ;;  %v4305_v14 = vld [vmem:[#allocation8 + $0x44] ss:$16 sps:$4 sm:$0xff]   ;;  %v4308_v15 = vld [vmem:[#allocation8 + $0x4c] ss:$16 sps:$4 sm:$0xff]  }
 0x239   :  { %1937 = vmatprep.subr.bf16.mxu0 %v4227_v16  ;;  %2019 = vmatprep.subr.bf16.mxu1 %v4230_v17  ;;  %v4303_v16 = vld [vmem:[#allocation8 + $0x40] ss:$16 sps:$4 sm:$0xff]   ;;  %v4306_v17 = vld [vmem:[#allocation8 + $0x48] ss:$16 sps:$4 sm:$0xff]  }
 0x23c   :  { %1938 = vmatpush1.bf16.msra.mxu0 %v4225_v18  ;;  %2020 = vmatpush1.bf16.msra.mxu1 %v4228_v19  ;;  %v4311_v18 = vld [vmem:[#allocation8 + $0x64] ss:$16 sps:$4 sm:$0xff]   ;;  %v4314_v19 = vld [vmem:[#allocation8 + $0x6c] ss:$16 sps:$4 sm:$0xff]  }
 0x23d   :  { %1939 = vmatprep.subr.bf16.mxu0 %v4233_v21  ;;  %2021 = vmatprep.subr.bf16.mxu1 %v4236_v22  ;;  %v4309_v21 = vld [vmem:[#allocation8 + $0x60] ss:$16 sps:$4 sm:$0xff]   ;;  %v4312_v22 = vld [vmem:[#allocation8 + $0x68] ss:$16 sps:$4 sm:$0xff]  }
 0x240   :  { %1940 = vmatpush1.bf16.msra.mxu0 %v4231_v23  ;;  %2022 = vmatpush1.bf16.msra.mxu1 %v4234_v24  ;;  %v4317_v23 = vld [vmem:[#allocation8 + $0x84] ss:$16 sps:$4 sm:$0xff]   ;;  %v4320_v24 = vld [vmem:[#allocation8 + $0x8c] ss:$16 sps:$4 sm:$0xff]  }
 0x241   :  { %1941 = vmatprep.subr.bf16.mxu0 %v4239_v25  ;;  %2023 = vmatprep.subr.bf16.mxu1 %v4242_v26  ;;  %v4315_v25 = vld [vmem:[#allocation8 + $0x80] ss:$16 sps:$4 sm:$0xff]   ;;  %v4318_v26 = vld [vmem:[#allocation8 + $0x88] ss:$16 sps:$4 sm:$0xff]  }
 0x244   :  { %1942 = vmatpush1.bf16.msra.mxu0 %v4237_v27  ;;  %2024 = vmatpush1.bf16.msra.mxu1 %v4240_v28  ;;  %v4323_v27 = vld [vmem:[#allocation8 + $0xa4] ss:$16 sps:$4 sm:$0xff]   ;;  %v4326_v28 = vld [vmem:[#allocation8 + $0xac] ss:$16 sps:$4 sm:$0xff]  }
 0x245   :  { %1943 = vmatprep.subr.bf16.mxu0 %v4245_v29  ;;  %2025 = vmatprep.subr.bf16.mxu1 %v4248_v30  ;;  %v4321_v29 = vld [vmem:[#allocation8 + $0xa0] ss:$16 sps:$4 sm:$0xff]   ;;  %v4324_v30 = vld [vmem:[#allocation8 + $0xa8] ss:$16 sps:$4 sm:$0xff]  }
 0x248   :  { %1944 = vmatpush1.bf16.msra.mxu0 %v4243_v31  ;;  %2026 = vmatpush1.bf16.msra.mxu1 %v4246_v20  ;;  %v4329_v31 = vld [vmem:[#allocation8 + $0xc4] ss:$16 sps:$4 sm:$0xff]   ;;  %v4332_v20 = vld [vmem:[#allocation8 + $0xcc] ss:$16 sps:$4 sm:$0xff]  }
 0x249   :  { %1945 = vmatprep.subr.bf16.mxu0 %v4251_v34  ;;  %2027 = vmatprep.subr.bf16.mxu1 %v4254_v35  ;;  %v4327_v34 = vld [vmem:[#allocation8 + $0xc0] ss:$16 sps:$4 sm:$0xff]   ;;  %v4330_v35 = vld [vmem:[#allocation8 + $0xc8] ss:$16 sps:$4 sm:$0xff]  }
 0x24c   :  { %1946 = vmatpush1.bf16.msra.mxu0 %v4249_v36  ;;  %2028 = vmatpush1.bf16.msra.mxu1 %v4252_v38  ;;  %v4335_v36 = vld [vmem:[#allocation8 + $0xe4] ss:$16 sps:$4 sm:$0xff]   ;;  %v4338_v38 = vld [vmem:[#allocation8 + $0xec] ss:$16 sps:$4 sm:$0xff]  }
 0x24d   :  { %1947 = vmatprep.subr.bf16.mxu0 %v4257_v39  ;;  %2029 = vmatprep.subr.bf16.mxu1 %v4260_v40  ;;  %v4333_v39 = vld [vmem:[#allocation8 + $0xe0] ss:$16 sps:$4 sm:$0xff]   ;;  %v4336_v40 = vld [vmem:[#allocation8 + $0xe8] ss:$16 sps:$4 sm:$0xff]  }
 0x250   :  { %1948 = vmatpush1.bf16.msra.mxu0 %v4255_v41  ;;  %2030 = vmatpush1.bf16.msra.mxu1 %v4258_v42  ;;  %v4341_v41 = vld [vmem:[#allocation8 + $0x104] ss:$16 sps:$4 sm:$0xff]   ;;  %v4344_v42 = vld [vmem:[#allocation8 + $0x10c] ss:$16 sps:$4 sm:$0xff]  }
 0x251   :  { %1949 = vmatprep.subr.bf16.mxu0 %v4263_v44  ;;  %2031 = vmatprep.subr.bf16.mxu1 %v4266_v45  ;;  %v4339_v44 = vld [vmem:[#allocation8 + $0x100] ss:$16 sps:$4 sm:$0xff]   ;;  %v4342_v45 = vld [vmem:[#allocation8 + $0x108] ss:$16 sps:$4 sm:$0xff]  }
 0x254   :  { %1950 = vmatpush1.bf16.msra.mxu0 %v4261_v46  ;;  %2032 = vmatpush1.bf16.msra.mxu1 %v4264_v47  ;;  %v4347_v46 = vld [vmem:[#allocation8 + $0x124] ss:$16 sps:$4 sm:$0xff]   ;;  %v4350_v47 = vld [vmem:[#allocation8 + $0x12c] ss:$16 sps:$4 sm:$0xff]  }
 0x255   :  { %1951 = vmatprep.subr.bf16.mxu0 %v4269_v49  ;;  %2033 = vmatprep.subr.bf16.mxu1 %v4272_v50  ;;  %v4348_v49 = vld [vmem:[#allocation8 + $0x128] ss:$16 sps:$4 sm:$0xff]   ;;  %v4353_v50 = vld [vmem:[#allocation8 + $0x144] ss:$16 sps:$4 sm:$0xff]  }
 0x258   :  { %1952 = vmatpush1.bf16.msra.mxu0 %v4267_v51  ;;  %2034 = vmatpush1.bf16.msra.mxu1 %v4270_v32  ;;  %v4356_v51 = vld [vmem:[#allocation8 + $0x14c] ss:$16 sps:$4 sm:$0xff]   ;;  %v4351_v32 = vld [vmem:[#allocation8 + $0x140] ss:$16 sps:$4 sm:$0xff]  }
 0x259   :  { %1953 = vmatprep.subr.bf16.mxu0 %v4275_v53  ;;  %2035 = vmatprep.subr.bf16.mxu1 %v4278_v54  ;;  %v4359_v53 = vld [vmem:[#allocation8 + $0x164] ss:$16 sps:$4 sm:$0xff]   ;;  %v4362_v54 = vld [vmem:[#allocation8 + $0x16c] ss:$16 sps:$4 sm:$0xff]  }
 0x25c   :  { %1954 = vmatpush1.bf16.msra.mxu0 %v4273_v55  ;;  %2036 = vmatpush1.bf16.msra.mxu1 %v4276_v56  ;;  %v4357_v55 = vld [vmem:[#allocation8 + $0x160] ss:$16 sps:$4 sm:$0xff]   ;;  %v4360_v56 = vld [vmem:[#allocation8 + $0x168] ss:$16 sps:$4 sm:$0xff]  }
 0x25d   :  { %1955 = vmatprep.subr.bf16.mxu0 %v4281_v33  ;;  %2037 = vmatprep.subr.bf16.mxu1 %v4284_v58  ;;  %v4368_v33 = vld [vmem:[#allocation8 + $0x18c] ss:$16 sps:$4 sm:$0xff]   ;;  %v4363_v58 = vld [vmem:[#allocation8 + $0x180] ss:$16 sps:$4 sm:$0xff]  }
 0x260   :  { %1956 = vmatpush1.bf16.msra.mxu0 %v4279_v59  ;;  %2038 = vmatpush1.bf16.msra.mxu1 %v4282_v60  ;;  %v4366_v59 = vld [vmem:[#allocation8 + $0x188] ss:$16 sps:$4 sm:$0xff]   ;;  %v4371_v60 = vld [vmem:[#allocation8 + $0x1a4] ss:$16 sps:$4 sm:$0xff]  }
 0x261   :  { %1957 = vmatprep.subr.bf16.mxu0 %v4287_v37  ;;  %2039 = vmatprep.subr.bf16.mxu1 %v4290_v62  ;;  %v4369_v37 = vld [vmem:[#allocation8 + $0x1a0] ss:$16 sps:$4 sm:$0xff]   ;;  %v4372_v62 = vld [vmem:[#allocation8 + $0x1a8] ss:$16 sps:$4 sm:$0xff]  }
 0x264   :  { %1958 = vmatpush1.bf16.msra.mxu0 %v4285_v63  ;;  %2040 = vmatpush1.bf16.msra.mxu1 %v4288_v2  ;;  %v4377_v63 = vld [vmem:[#allocation8 + $0x1c4] ss:$16 sps:$4 sm:$0xff]   ;;  %v4380_v2 = vld [vmem:[#allocation8 + $0x1cc] ss:$16 sps:$4 sm:$0xff]  }
 0x265   :  { %2856 = vmatprep.subr.bf16.mxu0 %v4293_v5  ;;  %2938 = vmatprep.subr.bf16.mxu1 %v4296_v6  ;;  %v4378_v5 = vld [vmem:[#allocation8 + $0x1c8] ss:$16 sps:$4 sm:$0xff]   ;;  %v4383_v6 = vld [vmem:[#allocation8 + $0x1e4] ss:$16 sps:$4 sm:$0xff]  }
 0x267   :  { %1960 = vmatmul.mubr.bf16.vlgmr.msra.gmra.mrb[4].mxu0 %v1094_v9  ;;  %2042 = vmatmul.mubr.bf16.vlgmr.msra.gmra.mrb[4].mxu1 %v1094_v9  ;;  %v4384_v9 = vld [vmem:[#allocation8 + $0x1e8] ss:$16 sps:$4 sm:$0xff]  }
 0x268   :  { %2857 = vmatpush1.bf16.msra.mxu0 %v4291_v7  ;;  %2939 = vmatpush1.bf16.msra.mxu1 %v4294_v8  ;;  %v4386_v7 = vld [vmem:[#allocation8 + $0x1ec] ss:$16 sps:$4 sm:$0xff]   ;;  %v4381_v8 = vld [vmem:[#allocation8 + $0x1e0] ss:$16 sps:$4 sm:$0xff]  }
 0x269   :  { %2858 = vmatprep.subr.bf16.mxu0 %v4299_v10  ;;  %2940 = vmatprep.subr.bf16.mxu1 %v4302_v11  ;;  %v4389_v10 = vld [vmem:[#allocation8 + $0x204] ss:$16 sps:$4 sm:$0xff]   ;;  %v4392_v11 = vld [vmem:[#allocation8 + $0x20c] ss:$16 sps:$4 sm:$0xff]  }
 0x26c   :  { %2859 = vmatpush1.bf16.msra.mxu0 %v4297_v12  ;;  %2941 = vmatpush1.bf16.msra.mxu1 %v4300_v13  ;;  %v4841_v12 = vld [vmem:[%s4880_s4] sm:$0xf] }
 0x26d   :  { %2860 = vmatprep.subr.bf16.mxu0 %v4305_v14  ;;  %2942 = vmatprep.subr.bf16.mxu1 %v4308_v15  ;;  %v1229_v13 = vrot.slane %v4841_v12, %v4811_v1  ;;  %v1233_v14 = vrot.slane %v4841_v12, %v4819_v0  ;;  %v1241_v15 = vrot.slane %v4841_v12, %v4822_v3 }
 0x270   :  { %2861 = vmatpush1.bf16.msra.mxu0 %v4303_v16  ;;  %2943 = vmatpush1.bf16.msra.mxu1 %v4306_v17 }
 0x271   :  { %2862 = vmatprep.subr.bf16.mxu0 %v4311_v18  ;;  %2944 = vmatprep.subr.bf16.mxu1 %v4314_v19 }
 0x274   :  { %2863 = vmatpush1.bf16.msra.mxu0 %v4309_v21  ;;  %2945 = vmatpush1.bf16.msra.mxu1 %v4312_v22 }
 0x275   :  { %2864 = vmatprep.subr.bf16.mxu0 %v4317_v23  ;;  %2946 = vmatprep.subr.bf16.mxu1 %v4320_v24 }
 0x278   :  { %2865 = vmatpush1.bf16.msra.mxu0 %v4315_v25  ;;  %2947 = vmatpush1.bf16.msra.mxu1 %v4318_v26 }
 0x279   :  { %2866 = vmatprep.subr.bf16.mxu0 %v4323_v27  ;;  %2948 = vmatprep.subr.bf16.mxu1 %v4326_v28 }
 0x27c   :  { %2867 = vmatpush1.bf16.msra.mxu0 %v4321_v29  ;;  %2949 = vmatpush1.bf16.msra.mxu1 %v4324_v30 }
 0x27d   :  { %2868 = vmatprep.subr.bf16.mxu0 %v4329_v31  ;;  %2950 = vmatprep.subr.bf16.mxu1 %v4332_v20 }
 0x280   :  { %2869 = vmatpush1.bf16.msra.mxu0 %v4327_v34  ;;  %2951 = vmatpush1.bf16.msra.mxu1 %v4330_v35 }
 0x281   :  { %2870 = vmatprep.subr.bf16.mxu0 %v4335_v36  ;;  %2952 = vmatprep.subr.bf16.mxu1 %v4338_v38 }
 0x284   :  { %2871 = vmatpush1.bf16.msra.mxu0 %v4333_v39  ;;  %2953 = vmatpush1.bf16.msra.mxu1 %v4336_v40  ;;  %v4387_v40 = vld [vmem:[#allocation8 + $0x200] ss:$16 sps:$4 sm:$0xff]  }
 0x285   :  { %2872 = vmatprep.subr.bf16.mxu0 %v4341_v41  ;;  %2954 = vmatprep.subr.bf16.mxu1 %v4344_v42  ;;  %v4390_v41 = vld [vmem:[#allocation8 + $0x208] ss:$16 sps:$4 sm:$0xff]  }
 0x288   :  { %2873 = vmatpush1.bf16.msra.mxu0 %v4339_v44  ;;  %2955 = vmatpush1.bf16.msra.mxu1 %v4342_v45  ;;  %v4395_v44 = vld [vmem:[#allocation8 + $0x224] ss:$16 sps:$4 sm:$0xff]   ;;  %v4398_v45 = vld [vmem:[#allocation8 + $0x22c] ss:$16 sps:$4 sm:$0xff]  }
 0x289   :  { %2874 = vmatprep.subr.bf16.mxu0 %v4347_v46  ;;  %2956 = vmatprep.subr.bf16.mxu1 %v4350_v47  ;;  %v4393_v47 = vld [vmem:[#allocation8 + $0x220] ss:$16 sps:$4 sm:$0xff]  }
 0x28c   :  { %2875 = vmatpush1.bf16.msra.mxu0 %v4345_v48  ;;  %2957 = vmatpush1.bf16.msra.mxu1 %v4348_v49  ;;  %v4396_v48 = vld [vmem:[#allocation8 + $0x228] ss:$16 sps:$4 sm:$0xff]   ;;  %v4401_v49 = vld [vmem:[#allocation8 + $0x244] ss:$16 sps:$4 sm:$0xff]  }
 0x28d   :  { %2876 = vmatprep.subr.bf16.mxu0 %v4353_v50  ;;  %2958 = vmatprep.subr.bf16.mxu1 %v4356_v51  ;;  %v4404_v50 = vld [vmem:[#allocation8 + $0x24c] ss:$16 sps:$4 sm:$0xff]   ;;  %v4399_v51 = vld [vmem:[#allocation8 + $0x240] ss:$16 sps:$4 sm:$0xff]  }
 0x290   :  { %2877 = vmatpush1.bf16.msra.mxu0 %v4351_v32  ;;  %2959 = vmatpush1.bf16.msra.mxu1 %v4354_v52  ;;  %v4402_v32 = vld [vmem:[#allocation8 + $0x248] ss:$16 sps:$4 sm:$0xff]   ;;  %v4407_v52 = vld [vmem:[#allocation8 + $0x264] ss:$16 sps:$4 sm:$0xff]  }
 0x291   :  { %2878 = vmatprep.subr.bf16.mxu0 %v4359_v53  ;;  %2960 = vmatprep.subr.bf16.mxu1 %v4362_v54  ;;  %v4410_v53 = vld [vmem:[#allocation8 + $0x26c] ss:$16 sps:$4 sm:$0xff]   ;;  %v4405_v54 = vld [vmem:[#allocation8 + $0x260] ss:$16 sps:$4 sm:$0xff]  }
 0x294   :  { %2879 = vmatpush1.bf16.msra.mxu0 %v4357_v55  ;;  %2961 = vmatpush1.bf16.msra.mxu1 %v4360_v56  ;;  %v4408_v55 = vld [vmem:[#allocation8 + $0x268] ss:$16 sps:$4 sm:$0xff]   ;;  %v4413_v56 = vld [vmem:[#allocation8 + $0x284] ss:$16 sps:$4 sm:$0xff]  }
 0x295   :  { %2880 = vmatprep.subr.bf16.mxu0 %v4365_v57  ;;  %2962 = vmatprep.subr.bf16.mxu1 %v4368_v33  ;;  %v4416_v57 = vld [vmem:[#allocation8 + $0x28c] ss:$16 sps:$4 sm:$0xff]   ;;  %v4411_v33 = vld [vmem:[#allocation8 + $0x280] ss:$16 sps:$4 sm:$0xff]  }
 0x298   :  { %2881 = vmatpush1.bf16.msra.mxu0 %v4363_v58  ;;  %2963 = vmatpush1.bf16.msra.mxu1 %v4366_v59  ;;  %v4414_v58 = vld [vmem:[#allocation8 + $0x288] ss:$16 sps:$4 sm:$0xff]   ;;  %v4419_v59 = vld [vmem:[#allocation8 + $0x2a4] ss:$16 sps:$4 sm:$0xff]  }
 0x299   :  { %2882 = vmatprep.subr.bf16.mxu0 %v4371_v60  ;;  %2964 = vmatprep.subr.bf16.mxu1 %v4374_v61  ;;  %v4422_v60 = vld [vmem:[#allocation8 + $0x2ac] ss:$16 sps:$4 sm:$0xff]   ;;  %v4417_v61 = vld [vmem:[#allocation8 + $0x2a0] ss:$16 sps:$4 sm:$0xff]  }
 0x29c   :  { %2883 = vmatpush1.bf16.msra.mxu0 %v4369_v37  ;;  %2965 = vmatpush1.bf16.msra.mxu1 %v4372_v62  ;;  %v4420_v37 = vld [vmem:[#allocation8 + $0x2a8] ss:$16 sps:$4 sm:$0xff]   ;;  %v4425_v62 = vld [vmem:[#allocation8 + $0x2c4] ss:$16 sps:$4 sm:$0xff]  }
 0x29d   :  { %2884 = vmatprep.subr.bf16.mxu0 %v4377_v63  ;;  %2966 = vmatprep.subr.bf16.mxu1 %v4380_v2  ;;  %v4428_v63 = vld [vmem:[#allocation8 + $0x2cc] ss:$16 sps:$4 sm:$0xff]   ;;  %v4423_v2 = vld [vmem:[#allocation8 + $0x2c0] ss:$16 sps:$4 sm:$0xff]  }
 0x2a0   :  { %2885 = vmatpush1.bf16.msra.mxu0 %v4375_v4  ;;  %2967 = vmatpush1.bf16.msra.mxu1 %v4378_v5  ;;  %v4426_v4 = vld [vmem:[#allocation8 + $0x2c8] ss:$16 sps:$4 sm:$0xff]   ;;  %v4431_v5 = vld [vmem:[#allocation8 + $0x2e4] ss:$16 sps:$4 sm:$0xff]  }
 0x2a1   :  { %2886 = vmatprep.subr.bf16.mxu0 %v4383_v6  ;;  %2968 = vmatprep.subr.bf16.mxu1 %v4386_v7  ;;  %v4434_v6 = vld [vmem:[#allocation8 + $0x2ec] ss:$16 sps:$4 sm:$0xff]   ;;  %v4429_v7 = vld [vmem:[#allocation8 + $0x2e0] ss:$16 sps:$4 sm:$0xff]  }
 0x2a4   :  { %2887 = vmatpush1.bf16.msra.mxu0 %v4381_v8  ;;  %2969 = vmatpush1.bf16.msra.mxu1 %v4384_v9  ;;  %v4432_v8 = vld [vmem:[#allocation8 + $0x2e8] ss:$16 sps:$4 sm:$0xff]   ;;  %v4437_v9 = vld [vmem:[#allocation8 + $0x304] ss:$16 sps:$4 sm:$0xff]  }
 0x2a5   :  { %2897 = vmatprep.subr.bf16.mxu0 %v4389_v10  ;;  %2979 = vmatprep.subr.bf16.mxu1 %v4392_v11  ;;  %v4440_v10 = vld [vmem:[#allocation8 + $0x30c] ss:$16 sps:$4 sm:$0xff]   ;;  %v4435_v11 = vld [vmem:[#allocation8 + $0x300] ss:$16 sps:$4 sm:$0xff]  }
 0x33a   :  { %v1961_v16 = vpop.f32.mrb[4].mxu0  ;;  %v4849_v17 = vpop.f32.mrb[4].mxu1 }
 0x33b   :  { %v3865_v18 = vadd.f32 %v1961_v16, %v1229_v13  ;;  %v1963_v19 = vpop.f32.mrb[5].mxu0  ;;  %v2045_v21 = vpop.f32.mrb[5].mxu1  ;;  %v4438_v13 = vld [vmem:[#allocation8 + $0x308] ss:$16 sps:$4 sm:$0xff]   ;;  %v4441_v16 = vld [vmem:[#allocation8 + $0x320] ss:$16 sps:$4 sm:$0xff]  }
 0x33c   :  { %v3866_v22 = vadd.f32 %v1963_v19, %v1233_v14  ;;  %v3868_v23 = vadd.f32 %v2045_v21, %v1241_v15  ;;  %v1965_v24 = vpop.f32.mrb[6].mxu0  ;;  %v2047_v25 = vpop.f32.mrb[6].mxu1  ;;  %v4443_v14 = vld [vmem:[#allocation8 + $0x324] ss:$16 sps:$4 sm:$0xff]   ;;  %v4446_v15 = vld [vmem:[#allocation8 + $0x32c] ss:$16 sps:$4 sm:$0xff]  }
 0x33d   :  { %v2050_v26 = vmul.f32 0.2, %v3865_v18  ;;  %v1966_v27 = vpop.f32.mrb[7].mxu0  ;;  %v2048_v28 = vpop.f32.mrb[7].mxu1  ;;  %v4449_v19 = vld [vmem:[#allocation8 + $0x344] ss:$16 sps:$4 sm:$0xff]  }
 0x33e   :  { %v2051_v29 = vmul.f32 0.2, %v3866_v22  ;;  %v2053_v30 = vmul.f32 0.2, %v3868_v23  ;;  %v4452_v21 = vld [vmem:[#allocation8 + $0x34c] ss:$16 sps:$4 sm:$0xff]   ;;  %v1237_v28 = vrot.slane %v4841_v12, %v4833_v43 }
 0x33f   :  { %v2054_v31 = vmax.f32 %v3865_v18, %v2050_v26  ;;  %v4444_v18 = vld [vmem:[#allocation8 + $0x328] ss:$16 sps:$4 sm:$0xff]   ;;  %v4455_v24 = vld [vmem:[#allocation8 + $0x364] ss:$16 sps:$4 sm:$0xff]   ;;  %v4458_v25 = vld [vmem:[#allocation8 + $0x36c] ss:$16 sps:$4 sm:$0xff]  }
 0x340   :  { %v2055_v20 = vmax.f32 %v3866_v22, %v2051_v29  ;;  %v2057_v34 = vmax.f32 %v3868_v23, %v2053_v30  ;;  %v4447_v22 = vld [vmem:[#allocation8 + $0x340] ss:$16 sps:$4 sm:$0xff]   ;;  %v4450_v23 = vld [vmem:[#allocation8 + $0x348] ss:$16 sps:$4 sm:$0xff]   ;;  %v4461_v29 = vld [vmem:[#allocation8 + $0x384] ss:$16 sps:$4 sm:$0xff]  }
 0x341   :  { %v2058_v35 = vmul.f32 0.000625, %v2054_v31  ;;  %v4453_v26 = vld [vmem:[#allocation8 + $0x360] ss:$16 sps:$4 sm:$0xff]   ;;  %v4456_v27 = vld [vmem:[#allocation8 + $0x368] ss:$16 sps:$4 sm:$0xff]  }
 0x342   :  { %v2059_v36 = vmul.f32 0.000625, %v2055_v20  ;;  %v2061_v38 = vmul.f32 0.000625, %v2057_v34  ;;  %v4464_v30 = vld [vmem:[#allocation8 + $0x38c] ss:$16 sps:$4 sm:$0xff]   ;;  %v3867_v34 = vadd.f32 %v4849_v17, %v1237_v28 }
 0x343   :  { %v2062_v42 = vpack.c.bf16 %v2058_v35, %v2058_v35  ;;  %v4459_v31 = vld [vmem:[#allocation8 + $0x380] ss:$16 sps:$4 sm:$0xff]   ;;  %v4462_v20 = vld [vmem:[#allocation8 + $0x388] ss:$16 sps:$4 sm:$0xff]   ;;  %v4467_v35 = vld [vmem:[#allocation8 + $0x3a4] ss:$16 sps:$4 sm:$0xff]  }
 0x344   :  { %v2063_v39 = vpack.c.bf16 %v2059_v36, %v2059_v36  ;;  %v2065_v46 = vpack.c.bf16 %v2061_v38, %v2061_v38  ;;  %v4470_v36 = vld [vmem:[#allocation8 + $0x3ac] ss:$16 sps:$4 sm:$0xff]   ;;  %v4465_v38 = vld [vmem:[#allocation8 + $0x3a0] ss:$16 sps:$4 sm:$0xff]   ;;  %v4473_v12 = vld [vmem:[#allocation8 + $0x3c4] ss:$16 sps:$4 sm:$0xff]  }
 0x345   :  { %v4479_v17 = vld [vmem:[#allocation8 + $0x3e4] ss:$16 sps:$4 sm:$0xff]  }
 0x346   :  { %2888 = vmatprep.mubr.bf16.mxu0 %v2063_v39  ;;  %2970 = vmatprep.mubr.bf16.mxu1 %v2063_v39  ;;  %v4468_v39 = vld [vmem:[#allocation8 + $0x3a8] ss:$16 sps:$4 sm:$0xff]  }
 0x347   :  { %2889 = vmatmul.mubr.bf16.vlgmr.msra.gmra.mrb[8].mxu0 %v2062_v42  ;;  %2971 = vmatmul.mubr.bf16.vlgmr.msra.gmra.mrb[8].mxu1 %v2062_v42  ;;  %v4471_v42 = vld [vmem:[#allocation8 + $0x3c0] ss:$16 sps:$4 sm:$0xff]  }
 0x348   :  { %2898 = vmatpush1.bf16.msra.mxu0 %v4387_v40  ;;  %2980 = vmatpush1.bf16.msra.mxu1 %v4390_v41  ;;  %v2052_v40 = vmul.f32 0.2, %v3867_v34  ;;  %v4476_v41 = vld [vmem:[#allocation8 + $0x3cc] ss:$16 sps:$4 sm:$0xff]  }
 0x349   :  { %2929 = vmatprep.mubr.bf16.mxu0 %v2065_v46  ;;  %3011 = vmatprep.mubr.bf16.mxu1 %v2065_v46  ;;  %v4482_v46 = vld [vmem:[#allocation8 + $0x3ec] ss:$16 sps:$4 sm:$0xff]  }
 0x34a   :  { %2899 = vmatprep.subr.bf16.mxu0 %v4395_v44  ;;  %2981 = vmatprep.subr.bf16.mxu1 %v4398_v45  ;;  %v4474_v44 = vld [vmem:[#allocation8 + $0x3c8] ss:$16 sps:$4 sm:$0xff]   ;;  %v2056_v45 = vmax.f32 %v3867_v34, %v2052_v40 }
 0x34c   :  { %2900 = vmatpush1.bf16.msra.mxu0 %v4393_v47  ;;  %2982 = vmatpush1.bf16.msra.mxu1 %v4396_v48  ;;  %v4477_v47 = vld [vmem:[#allocation8 + $0x3e0] ss:$16 sps:$4 sm:$0xff]   ;;  %v4480_v48 = vld [vmem:[#allocation8 + $0x3e8] ss:$16 sps:$4 sm:$0xff]  }
 0x34d   :  { %2901 = vmatprep.subr.bf16.mxu0 %v4401_v49  ;;  %2983 = vmatprep.subr.bf16.mxu1 %v4404_v50  ;;  %v2060_v49 = vmul.f32 0.000625, %v2056_v45  ;;  %v4483_v50 = vld [vmem:[#allocation10 + $0x40] sm:$0xff]  }
 0x350   :  { %2902 = vmatpush1.bf16.msra.mxu0 %v4399_v51  ;;  %2984 = vmatpush1.bf16.msra.mxu1 %v4402_v32  ;;  %v4484_v51 = vld [vmem:[#allocation10 + $0xc0] sm:$0xff]  }
 0x351   :  { %2903 = vmatprep.subr.bf16.mxu0 %v4407_v52  ;;  %2985 = vmatprep.subr.bf16.mxu1 %v4410_v53  ;;  %v4485_v32 = vld [vmem:[#allocation10] sm:$0xff]   ;;  %v2064_v53 = vpack.c.bf16 %v2060_v49, %v2060_v49 }
 0x352   :  { %v4486_v52 = vld [vmem:[#allocation10 + $0x80] sm:$0xff]  }
 0x354   :  { %2904 = vmatpush1.bf16.msra.mxu0 %v4405_v54  ;;  %2986 = vmatpush1.bf16.msra.mxu1 %v4408_v55  ;;  %v4487_v54 = vld [vmem:[#allocation10 + $0x48] sm:$0xff]  }
 0x355   :  { %2905 = vmatprep.subr.bf16.mxu0 %v4413_v56  ;;  %2987 = vmatprep.subr.bf16.mxu1 %v4416_v57  ;;  %v4488_v55 = vld [vmem:[#allocation10 + $0xc8] sm:$0xff]  }
 0x356   :  { %v4489_v56 = vld [vmem:[#allocation10 + $0x8] sm:$0xff]  }
 0x357   :  { %v4490_v57 = vld [vmem:[#allocation10 + $0x88] sm:$0xff]  }
 0x358   :  { %2906 = vmatpush1.bf16.msra.mxu0 %v4411_v33  ;;  %2988 = vmatpush1.bf16.msra.mxu1 %v4414_v58  ;;  %v4491_v33 = vld [vmem:[#allocation10 + $0x50] sm:$0xff]  }
 0x359   :  { %2907 = vmatprep.subr.bf16.mxu0 %v4419_v59  ;;  %2989 = vmatprep.subr.bf16.mxu1 %v4422_v60  ;;  %v4492_v58 = vld [vmem:[#allocation10 + $0xd0] sm:$0xff]  }
 0x35a   :  { %v4493_v59 = vld [vmem:[#allocation10 + $0x10] sm:$0xff]  }
 0x35b   :  { %v4494_v60 = vld [vmem:[#allocation10 + $0x90] sm:$0xff]  }
 0x35c   :  { %2908 = vmatpush1.bf16.msra.mxu0 %v4417_v61  ;;  %2990 = vmatpush1.bf16.msra.mxu1 %v4420_v37  ;;  %v4495_v61 = vld [vmem:[#allocation10 + $0x58] sm:$0xff]  }
 0x35d   :  { %2909 = vmatprep.subr.bf16.mxu0 %v4425_v62  ;;  %2991 = vmatprep.subr.bf16.mxu1 %v4428_v63  ;;  %v4496_v37 = vld [vmem:[#allocation10 + $0xd8] sm:$0xff]  }
 0x35e   :  { %v4497_v62 = vld [vmem:[#allocation10 + $0x18] sm:$0xff]  }
 0x35f   :  { %v4498_v63 = vld [vmem:[#allocation10 + $0x98] sm:$0xff]  }
 0x360   :  { %2910 = vmatpush1.bf16.msra.mxu0 %v4423_v2  ;;  %2992 = vmatpush1.bf16.msra.mxu1 %v4426_v4  ;;  %v4499_v2 = vld [vmem:[#allocation10 + $0x60] sm:$0xff]  }
 0x361   :  { %2911 = vmatprep.subr.bf16.mxu0 %v4431_v5  ;;  %2993 = vmatprep.subr.bf16.mxu1 %v4434_v6  ;;  %v4500_v4 = vld [vmem:[#allocation10 + $0xe0] sm:$0xff]  }
 0x362   :  { %v4501_v5 = vld [vmem:[#allocation10 + $0x20] sm:$0xff]  }
 0x363   :  { %v4502_v6 = vld [vmem:[#allocation10 + $0xa0] sm:$0xff]  }
 0x364   :  { %2912 = vmatpush1.bf16.msra.mxu0 %v4429_v7  ;;  %2994 = vmatpush1.bf16.msra.mxu1 %v4432_v8  ;;  %v4503_v7 = vld [vmem:[#allocation10 + $0x68] sm:$0xff]  }
 0x365   :  { %2913 = vmatprep.subr.bf16.mxu0 %v4437_v9  ;;  %2995 = vmatprep.subr.bf16.mxu1 %v4440_v10  ;;  %v4504_v8 = vld [vmem:[#allocation10 + $0xe8] sm:$0xff]  }
 0x366   :  { %v4505_v9 = vld [vmem:[#allocation10 + $0x28] sm:$0xff]  }
 0x367   :  { %v4506_v10 = vld [vmem:[#allocation10 + $0xa8] sm:$0xff]  }
 0x368   :  { %2914 = vmatpush1.bf16.msra.mxu0 %v4435_v11  ;;  %2996 = vmatpush1.bf16.msra.mxu1 %v4438_v13  ;;  %v4507_v11 = vld [vmem:[#allocation10 + $0x70] sm:$0xff]  }
 0x369   :  { %2915 = vmatprep.subr.bf16.mxu0 %v4443_v14  ;;  %2997 = vmatprep.subr.bf16.mxu1 %v4446_v15  ;;  %v4508_v13 = vld [vmem:[#allocation10 + $0xf0] sm:$0xff]  }
 0x36a   :  { %v4509_v14 = vld [vmem:[#allocation10 + $0x30] sm:$0xff]  }
 0x36b   :  { %v4510_v15 = vld [vmem:[#allocation10 + $0xb0] sm:$0xff]  }
 0x36c   :  { %2916 = vmatpush1.bf16.msra.mxu0 %v4441_v16  ;;  %2998 = vmatpush1.bf16.msra.mxu1 %v4444_v18  ;;  %v4511_v16 = vld [vmem:[#allocation10 + $0x78] sm:$0xff]  }
 0x36d   :  { %2917 = vmatprep.subr.bf16.mxu0 %v4449_v19  ;;  %2999 = vmatprep.subr.bf16.mxu1 %v4452_v21  ;;  %v4512_v18 = vld [vmem:[#allocation10 + $0xf8] sm:$0xff]  }
 0x36e   :  { %v4513_v19 = vld [vmem:[#allocation10 + $0x38] sm:$0xff]  }
 0x36f   :  { %v4514_v21 = vld [vmem:[#allocation10 + $0xb8] sm:$0xff]  }
 0x370   :  { %2918 = vmatpush1.bf16.msra.mxu0 %v4447_v22  ;;  %3000 = vmatpush1.bf16.msra.mxu1 %v4450_v23  ;;  %v2194_v22 = vld [vmem:[%s4882_s6] sm:$0xf] }
 0x371   :  { %2919 = vmatprep.subr.bf16.mxu0 %v4455_v24  ;;  %3001 = vmatprep.subr.bf16.mxu1 %v4458_v25  ;;  %v2199_v23 = vrot.slane %v2194_v22, %v4811_v1  ;;  %v2207_v24 = vrot.slane %v2194_v22, %v4833_v43  ;;  %v2203_v25 = vrot.slane %v2194_v22, %v4819_v0 }
 0x374   :  { %2920 = vmatpush1.bf16.msra.mxu0 %v4453_v26  ;;  %3002 = vmatpush1.bf16.msra.mxu1 %v4456_v27  ;;  %v2211_v26 = vrot.slane %v2194_v22, %v4822_v3 }
 0x375   :  { %2921 = vmatprep.subr.bf16.mxu0 %v4461_v29  ;;  %3003 = vmatprep.subr.bf16.mxu1 %v4464_v30 }
 0x378   :  { %2922 = vmatpush1.bf16.msra.mxu0 %v4459_v31  ;;  %3004 = vmatpush1.bf16.msra.mxu1 %v4462_v20 }
 0x379   :  { %2923 = vmatprep.subr.bf16.mxu0 %v4467_v35  ;;  %3005 = vmatprep.subr.bf16.mxu1 %v4470_v36 }
 0x37c   :  { %2924 = vmatpush1.bf16.msra.mxu0 %v4465_v38  ;;  %3006 = vmatpush1.bf16.msra.mxu1 %v4468_v39 }
 0x37d   :  { %2925 = vmatprep.subr.bf16.mxu0 %v4473_v12  ;;  %3007 = vmatprep.subr.bf16.mxu1 %v4476_v41 }
 0x380   :  { %2926 = vmatpush1.bf16.msra.mxu0 %v4471_v42  ;;  %3008 = vmatpush1.bf16.msra.mxu1 %v4474_v44 }
 0x381   :  { %2927 = vmatprep.subr.bf16.mxu0 %v4479_v17  ;;  %3009 = vmatprep.subr.bf16.mxu1 %v4482_v46 }
 0x384   :  { %2928 = vmatpush1.bf16.msra.mxu0 %v4477_v47  ;;  %3010 = vmatpush1.bf16.msra.mxu1 %v4480_v48 }
 0x385   :  { %3817 = vmatprep.subr.bf16.mxu0 %v4483_v50  ;;  %3839 = vmatprep.subr.bf16.mxu1 %v4484_v51 }
 0x387   :  { %2930 = vmatmul.mubr.bf16.vlgmr.msra.gmra.mrb[8].mxu0 %v2064_v53  ;;  %3012 = vmatmul.mubr.bf16.vlgmr.msra.gmra.mrb[8].mxu1 %v2064_v53  ;;  %v3784_v53 = vld [vmem:[%s4884_s8] ss:$0 sm:$0xff] }
 0x388   :  { %3818 = vmatpush3.bf16.msra.mxu0 %v4485_v32  ;;  %3840 = vmatpush3.bf16.msra.mxu1 %v4486_v52 }
 0x389   :  { %3819 = vmatprep.subr.bf16.mxu0 %v4487_v54  ;;  %3841 = vmatprep.subr.bf16.mxu1 %v4488_v55 }
 0x38c   :  { %3820 = vmatpush3.bf16.msra.mxu0 %v4489_v56  ;;  %3842 = vmatpush3.bf16.msra.mxu1 %v4490_v57 }
 0x38d   :  { %3821 = vmatprep.subr.bf16.mxu0 %v4491_v33  ;;  %3843 = vmatprep.subr.bf16.mxu1 %v4492_v58 }
 0x390   :  { %3822 = vmatpush3.bf16.msra.mxu0 %v4493_v59  ;;  %3844 = vmatpush3.bf16.msra.mxu1 %v4494_v60 }
 0x391   :  { %3823 = vmatprep.subr.bf16.mxu0 %v4495_v61  ;;  %3845 = vmatprep.subr.bf16.mxu1 %v4496_v37 }
 0x394   :  { %3824 = vmatpush3.bf16.msra.mxu0 %v4497_v62  ;;  %3846 = vmatpush3.bf16.msra.mxu1 %v4498_v63 }
 0x395   :  { %3825 = vmatprep.subr.bf16.mxu0 %v4499_v2  ;;  %3847 = vmatprep.subr.bf16.mxu1 %v4500_v4 }
 0x398   :  { %3826 = vmatpush3.bf16.msra.mxu0 %v4501_v5  ;;  %3848 = vmatpush3.bf16.msra.mxu1 %v4502_v6 }
 0x399   :  { %3827 = vmatprep.subr.bf16.mxu0 %v4503_v7  ;;  %3849 = vmatprep.subr.bf16.mxu1 %v4504_v8 }
 0x39c   :  { %3828 = vmatpush3.bf16.msra.mxu0 %v4505_v9  ;;  %3850 = vmatpush3.bf16.msra.mxu1 %v4506_v10 }
 0x39d   :  { %3829 = vmatprep.subr.bf16.mxu0 %v4507_v11  ;;  %3851 = vmatprep.subr.bf16.mxu1 %v4508_v13 }
 0x3a0   :  { %3830 = vmatpush3.bf16.msra.mxu0 %v4509_v14  ;;  %3852 = vmatpush3.bf16.msra.mxu1 %v4510_v15 }
 0x3a1   :  { %3831 = vmatprep.subr.bf16.mxu0 %v4511_v16  ;;  %3853 = vmatprep.subr.bf16.mxu1 %v4512_v18 }
 0x3a4   :  { %3832 = vmatpush3.bf16.msra.mxu0 %v4513_v19  ;;  %3854 = vmatpush3.bf16.msra.mxu1 %v4514_v21 }
 0x45a   :  { %v2931_v27 = vpop.f32.mrb[8].mxu0  ;;  %v3013_v28 = vpop.f32.mrb[8].mxu1 }
 0x45b   :  { %v3869_v29 = vadd.f32 %v2931_v27, %v2199_v23  ;;  %v3871_v30 = vadd.f32 %v3013_v28, %v2207_v24  ;;  %v2933_v31 = vpop.f32.mrb[9].mxu0  ;;  %v3015_v20 = vpop.f32.mrb[9].mxu1 }
 0x45c   :  { %v3870_v34 = vadd.f32 %v2933_v31, %v2203_v25  ;;  %v3872_v35 = vadd.f32 %v3015_v20, %v2211_v26  ;;  %v2935_v36 = vpop.f32.mrb[10].mxu0  ;;  %v3017_v38 = vpop.f32.mrb[10].mxu1 }
 0x45d   :  { %v3020_v39 = vmul.f32 0.2, %v3869_v29  ;;  %v3022_v40 = vmul.f32 0.2, %v3871_v30  ;;  %v2936_v12 = vpop.f32.mrb[11].mxu0  ;;  %v3018_v1 = vpop.f32.mrb[11].mxu1 }
 0x45e   :  { %v3021_v41 = vmul.f32 0.2, %v3870_v34  ;;  %v3023_v43 = vmul.f32 0.2, %v3872_v35 }
 0x45f   :  { %v3024_v42 = vmax.f32 %v3869_v29, %v3020_v39  ;;  %v3026_v0 = vmax.f32 %v3871_v30, %v3022_v40 }
 0x460   :  { %v3025_v44 = vmax.f32 %v3870_v34, %v3021_v41  ;;  %v3027_v3 = vmax.f32 %v3872_v35, %v3023_v43 }
 0x461   :  { %v3028_v45 = vmul.f32 0.000625, %v3024_v42  ;;  %v3030_v17 = vmul.f32 0.000625, %v3026_v0 }
 0x462   :  { %v3029_v46 = vmul.f32 0.000625, %v3025_v44  ;;  %v3031_v47 = vmul.f32 0.000625, %v3027_v3 }
 0x463   :  { %v3032_v50 = vpack.c.bf16 %v3028_v45, %v3028_v45  ;;  %v3034_v51 = vpack.c.bf16 %v3030_v17, %v3030_v17 }
 0x464   :  { %v3033_v48 = vpack.c.bf16 %v3029_v46, %v3029_v46  ;;  %v3035_v49 = vpack.c.bf16 %v3031_v47, %v3031_v47 }
 0x466   :  { %3331 = vmatprep.mubr.bf16.mxu0 %v3033_v48  ;;  %3371 = vmatprep.mubr.bf16.mxu1 %v3035_v49 }
 0x467   :  { %3332 = vmatmul.mubr.bf16.vlgmr.msra.gmra.mrb[12].mxu0 %v3032_v50  ;;  %3372 = vmatmul.mubr.bf16.vlgmr.msra.gmra.mrb[12].mxu1 %v3034_v51 }
 0x53a   :  { %v3833_v32 = vpop.f32.mrb[12].mxu0  ;;  %v3855_v52 = vpop.f32.mrb[12].mxu1 }
 0x53b   :  { %v3834_v54 = vpop.f32.mrb[13].mxu0  ;;  %v3856_v55 = vpop.f32.mrb[13].mxu1 }
 0x53c   :  { %v3835_v56 = vadd.f32 %v3834_v54, %v3833_v32  ;;  %v3857_v57 = vadd.f32 %v3856_v55, %v3855_v52  ;;  %v3836_v33 = vpop.f32.mrb[14].mxu0  ;;  %v3858_v58 = vpop.f32.mrb[14].mxu1 }
 0x53d   :  { %v3837_v59 = vpop.f32.mrb[15].mxu0  ;;  %v3859_v60 = vpop.f32.mrb[15].mxu1 }
 0x53e   :  { %v3334_v61 = vadd.f32 %v3835_v56, %v3784_v53 }
 0x540   :  { %v3374_v37 = vadd.f32 %v3857_v57, %v3334_v61 }
 0x542   :  { %v3379_v62 = vmul.f32 0.2, %v3374_v37 }
 0x544   :  { %v3380_v63 = vmax.f32 %v3374_v37, %v3379_v62 }
 0x546   :  { %v3381_v2 = vmul.f32 1.4142135, %v3380_v63 }
 0x548   :  { %3382 = vst [vmem:[#allocation11] sm:$0xff] %v3381_v2 }
 0x549   :  { %4639 = shalt.err (!%p4636_p2)
}
 0x54a   :  { %s4640_s14 = scalar_lea.hbm %s4885_s9, 128 }
 0x54b   :  { %p4641_p3 = scmp.ne.s32.totalorder %s4885_s9, %s4640_s14  ;;  %p4644_p4 = scmp.lt.u32.totalorder %s4640_s14, %s4885_s9 }
 0x54d   :  { %p4646_p5 = pnand %p4644_p4, %p4641_p3 }
 0x54f   :  { %4649 = shalt.err (!%p4646_p5)
}
 0x550   :  { %3392 = dma.vmem_to_hbm [thread:$0]  %s3390_s13, 128, %s4885_s9, [#allocation4]  }
 0x551   :  { %4656 = dma.done.wait [#allocation4], 128  }
 0x552   :  { %4657 = vsyncadd [#allocation4], 4294967168 }
 0x553   :  { %3396 = vsyncpa [#allocation3], 1 }
 0x554   :  { %3397 = vsyncpa [#allocation6], 1 }
 0x555   :  { %3398 = vsyncpa [#allocation9], 1 }
 0x556   :  { %3399 = vsyncpa [#allocation4], 1 }

</bundles_post_ra>
